<compile_context>
chip_gen: v7x
topology: tpu7x:2x2x1
jax: 0.10.0
libtpu: 0.0.40
codegen_flags: <defaults>
</compile_context>

<pallas_src>
import math
import numpy as np
import jax
import jax.numpy as jnp
from jax.experimental import pallas as pl
from jax.experimental.pallas import tpu as pltpu


# ----------------------------------------------------------------------------
# Kernel factory: one grid step == one (batch tile, sequence chunk).
# Row layout inside the kernel is node-major: row = n*TB + b_in.
# ----------------------------------------------------------------------------
def _make_gru_kernel(Tc, H, N, TB):

    def build_ru(g_lo, g_hi, offset):
        # torch.chunk remap in node-major layout: for target node n, the gate
        # source is node (offset+n)//2 and the lo/hi half is (offset+n)%2.
        # Because the batch index is the fast row axis, every target node is a
        # whole TB-row band -> N static band slices + one concat (no per-row ops).
        pieces = []
        for n in range(N):
            s = offset + n
            src = (s // 2) * TB
            half = g_hi if (s % 2) else g_lo
            pieces.append(half[src:src + TB, :])
        return pieces[0] if len(pieces) == 1 else jnp.concatenate(pieces, axis=0)

    def kernel(x_ref,        # (Tc, TBN, 1)  inputs for this seq chunk / batch tile
               w1x_ref,      # (1, 2H)   W1 row 0   (input column)
               w1h_ref,      # (H, 2H)   W1 rows 1: (hidden columns)
               b1_ref,       # (1, 2H)
               w2x_ref,      # (1, H)
               w2h_ref,      # (H, H)
               b2_ref,       # (1, H)
               out_ref):     # (TBN, H)  recurrent hidden state (resident block)
        # init the resident hidden state at the first sequence chunk
        @pl.when(pl.program_id(1) == 0)
        def _init():
            out_ref[...] = jnp.zeros_like(out_ref)

        w1h = w1h_ref[...]
        w2h = w2h_ref[...]

        # Hoisted, loop-invariant per chunk: fold x*W_x + bias for every
        # timestep of the chunk before entering the recurrence.
        x = x_ref[...]                                     # (Tc, TBN, 1)
        xb1 = x * w1x_ref[...] + b1_ref[...]               # (Tc, TBN, 2H)
        xb2 = x * w2x_ref[...] + b2_ref[...]               # (Tc, TBN, H)

        h = out_ref[...]
        for t in range(Tc):                                # static unroll
            # linear1 (fused gate halves): sigmoid(x*w1x + h@w1h + b1)
            z = xb1[t] + jnp.dot(h.astype(w1h.dtype), w1h,
                                 preferred_element_type=jnp.float32)
            g = jax.nn.sigmoid(z)                          # (TBN, 2H)
            g_lo = g[:, :H]
            g_hi = g[:, H:]
            # torch.chunk row/half remap (exact) as static band slices.
            r = build_ru(g_lo, g_hi, 0)                    # (TBN, H)
            u = build_ru(g_lo, g_hi, N)                    # (TBN, H)
            # linear2: tanh(x*w2x + (r*h)@w2h + b2)
            c = jnp.tanh(xb2[t] + jnp.dot((r * h).astype(w2h.dtype), w2h,
                                          preferred_element_type=jnp.float32))
            h = u * h + (1.0 - u) * c
        out_ref[...] = h

    return kernel


# ----------------------------------------------------------------------------
# Wrapper (glue): node-major permutation, parameter splitting, pallas_call.
# ----------------------------------------------------------------------------
def gru_forward_pallas(inputs, W1, b1, W2, b2, hidden_dim, *,
                       seq_chunk=None, batch_tile=None,
                       matmul_dtype=jnp.float32):
    """inputs: (B, S, N) float32.  Returns last hidden state: (B, N, H)."""
    B, S, N = inputs.shape
    H = hidden_dim

    Tc = S if seq_chunk is None else seq_chunk
    TB = B if batch_tile is None else batch_tile
    assert S % Tc == 0, "seq_chunk must divide seq_len"
    assert B % TB == 0, "batch_tile must divide batch_size"
    nbt = B // TB
    BN = B * N
    TBN = TB * N

    # Node-major row layout per batch tile: row = n*TB + b_in.  xs: (S, BN, 1).
    xs = (inputs.astype(jnp.float32)
          .reshape(nbt, TB, S, N)
          .transpose(2, 0, 3, 1)          # (S, nbt, N, TB)
          .reshape(S, BN, 1))

    # parameter splits (x row vs. hidden rows); gate halves stay fused.
    w1x = W1[0:1, :].astype(jnp.float32)            # (1, 2H)
    w1h = W1[1:, :].astype(matmul_dtype)            # (H, 2H)
    b1r = b1.reshape(1, 2 * H).astype(jnp.float32)  # (1, 2H)
    w2x = W2[0:1, :].astype(jnp.float32)            # (1, H)
    w2h = W2[1:, :].astype(matmul_dtype)            # (H, H)
    b2r = b2.reshape(1, H).astype(jnp.float32)      # (1, H)

    kernel = _make_gru_kernel(Tc, H, N, TB)
    grid = (nbt, S // Tc)

    def const_spec(shape):
        return pl.BlockSpec(shape, lambda ib, it, _s=shape: (0,) * len(_s))

    in_specs = [
        pl.BlockSpec((Tc, TBN, 1), lambda ib, it: (it, ib, 0)),   # xs
        const_spec((1, 2 * H)),                                   # w1x
        const_spec((H, 2 * H)),                                   # w1h
        const_spec((1, 2 * H)),                                   # b1
        const_spec((1, H)),                                       # w2x
        const_spec((H, H)),                                       # w2h
        const_spec((1, H)),                                       # b2
    ]

    # Advisory cost estimate so XLA schedules around the serial recurrence.
    flops = S * BN * 6 * H * H                      # (H,2H) + (H,H) dots per node/step
    transcendentals = S * BN * 3 * H                # sigmoid(2H) + tanh(H)
    bytes_accessed = 4 * (S * BN
                          + (H + 1) * 2 * H + 2 * H
                          + (H + 1) * H + H
                          + BN * H)
    cost = pl.CostEstimate(flops=int(flops),
                           transcendentals=int(transcendentals),
                           bytes_accessed=int(bytes_accessed))

    # Per-generation VMEM budget (v7x: 64 MiB per TC -> 32 MiB; v5e/v6e -> 48 MiB).
    try:
        vmem_cap = int(pltpu.get_tpu_info().vmem_capacity_bytes)
    except Exception:
        vmem_cap = 64 * 1024 * 1024
    vmem_limit = int(min(vmem_cap // 2, 48 * 1024 * 1024))

    out = pl.pallas_call(
        kernel,
        out_shape=jax.ShapeDtypeStruct((BN, H), jnp.float32),
        grid_spec=pltpu.PrefetchScalarGridSpec(
            num_scalar_prefetch=0,
            grid=grid,
            in_specs=in_specs,
            out_specs=pl.BlockSpec((TBN, H), lambda ib, it: (ib, 0)),
        ),
        compiler_params=pltpu.CompilerParams(
            dimension_semantics=("parallel", "arbitrary"),
            vmem_limit_bytes=vmem_limit,
        ),
        cost_estimate=cost,
    )(xs, w1x, w1h, b1r, w2x, w2h, b2r)

    # Undo the node-major permutation: kernel row ib*TBN + n*TB + b_in -> (b, n).
    return (out.reshape(nbt, N, TB, H)
            .transpose(0, 2, 1, 3)
            .reshape(B, N, H))


# ----------------------------------------------------------------------------
# Pure-JAX reference, mirroring the PyTorch forward exactly (for validation).
# ----------------------------------------------------------------------------
def gru_forward_reference(inputs, W1, b1, W2, b2, H):
    B, S, N = inputs.shape

    def gru_linear(x, hidden, W, b, out_dim):
        xi = x.reshape(B, N, 1)
        hh = hidden.reshape(B, N, H)
        cat = jnp.concatenate([xi, hh], axis=2).reshape(-1, H + 1)
        out = cat @ W + b
        return out.reshape(B, N * out_dim)

    h = jnp.zeros((B, N * H), dtype=inputs.dtype)
    for i in range(S):
        x = inputs[:, i, :]
        conc = jax.nn.sigmoid(gru_linear(x, h, W1, b1, 2 * H))
        r, u = jnp.split(conc, 2, axis=1)
        c = jnp.tanh(gru_linear(x, r * h, W2, b2, H))
        h = u * h + (1.0 - u) * c
    return h.reshape(B, N, H)


# ----------------------------------------------------------------------------
if __name__ == "__main__":
    # batch, seq_len, num_nodes(=input_dim), hidden_dim
    B, S, N, H = 4, 8, 8, 32

    key = jax.random.PRNGKey(0)
    k_x, k_w1, k_w2 = jax.random.split(key, 3)

    inputs = jax.random.normal(k_x, (B, S, N), dtype=jnp.float32)

    # deterministic parameter init matching the module's __init__:
    # xavier_uniform_ weights, constant biases (linear1 bias=1.0, linear2 bias=0.0)
    bound1 = math.sqrt(6.0 / ((H + 1) + 2 * H))
    W1 = jax.random.uniform(k_w1, (H + 1, 2 * H), minval=-bound1, maxval=bound1,
                            dtype=jnp.float32)
    b1 = jnp.full((2 * H,), 1.0, dtype=jnp.float32)
    bound2 = math.sqrt(6.0 / ((H + 1) + H))
    W2 = jax.random.uniform(k_w2, (H + 1, H), minval=-bound2, maxval=bound2,
                            dtype=jnp.float32)
    b2 = jnp.zeros((H,), dtype=jnp.float32)

    ref = gru_forward_reference(inputs, W1, b1, W2, b2, H)

    # Preferred config for this size: whole batch, whole sequence -> grid (1, 1).
    out = gru_forward_pallas(inputs, W1, b1, W2, b2, H)
    out = jax.block_until_ready(out)
    assert out.shape == (B, N, H)
    np.testing.assert_allclose(np.asarray(out), np.asarray(ref),
                               rtol=1e-3, atol=1e-3)

    # Also exercise the general batch-tiled / sequence-chunked path.
    out2 = gru_forward_pallas(inputs, W1, b1, W2, b2, H,
                              seq_chunk=4, batch_tile=2)
    out2 = jax.block_until_ready(out2)
    np.testing.assert_allclose(np.asarray(out2), np.asarray(ref),
                               rtol=1e-3, atol=1e-3)

    print("KERNEL_OK")
</pallas_src>

<mosaic_0001>
module attributes {stable_mosaic.version = 11 : i64} {
  func.func @kernel(%arg0: i32, %arg1: i32, %arg2: memref<8x32x1xf32, #tpu.memory_space<vmem>>, %arg3: memref<1x64xf32, #tpu.memory_space<vmem>>, %arg4: memref<32x64xf32, #tpu.memory_space<vmem>>, %arg5: memref<1x64xf32, #tpu.memory_space<vmem>>, %arg6: memref<1x32xf32, #tpu.memory_space<vmem>>, %arg7: memref<32x32xf32, #tpu.memory_space<vmem>>, %arg8: memref<1x32xf32, #tpu.memory_space<vmem>>, %arg9: memref<32x32xf32, #tpu.memory_space<vmem>>) attributes {dimension_semantics = [#tpu.dimension_semantics<parallel>, #tpu.dimension_semantics<arbitrary>], iteration_bounds = array<i64: 1, 1>, scalar_prefetch = 0 : i64, scratch_operands = 0 : i64, tpu.core_type = #tpu.core_type<tc>, window_params = [{transform_indices = @transform_0, window_bounds = array<i64: 8, 32, 1>}, {pipeline_mode = #tpu.pipeline_mode<synchronous>, transform_indices = @transform_1, window_bounds = array<i64: 1, 64>}, {pipeline_mode = #tpu.pipeline_mode<synchronous>, transform_indices = @transform_2, window_bounds = array<i64: 32, 64>}, {pipeline_mode = #tpu.pipeline_mode<synchronous>, transform_indices = @transform_3, window_bounds = array<i64: 1, 64>}, {pipeline_mode = #tpu.pipeline_mode<synchronous>, transform_indices = @transform_4, window_bounds = array<i64: 1, 32>}, {pipeline_mode = #tpu.pipeline_mode<synchronous>, transform_indices = @transform_5, window_bounds = array<i64: 32, 32>}, {pipeline_mode = #tpu.pipeline_mode<synchronous>, transform_indices = @transform_6, window_bounds = array<i64: 1, 32>}, {transform_indices = @transform_7, window_bounds = array<i64: 32, 32>}]} {
    %c0_i32 = arith.constant 0 : i32
    %0 = arith.cmpi eq, %arg1, %c0_i32 : i32
    %1 = arith.extui %0 : i1 to i32
    %c0_i32_0 = arith.constant 0 : i32
    %2 = arith.cmpi ne, %1, %c0_i32_0 : i32
    scf.if %2 {
      %cst_50 = arith.constant 0.000000e+00 : f32
      %346 = vector.broadcast %cst_50 : f32 to vector<32x32xf32>
      %c0_51 = arith.constant 0 : index
      %c0_52 = arith.constant 0 : index
      %347 = vector.load %arg9[%c0_51, %c0_52] : memref<32x32xf32, #tpu.memory_space<vmem>>, vector<32x32xf32>
      tpu.vector_store %arg9[%c0_51, %c0_52], %346 {strides = array<i32>} : memref<32x32xf32, #tpu.memory_space<vmem>>, vector<32x32xf32>,
    } else {
    }
    %c0 = arith.constant 0 : index
    %c0_1 = arith.constant 0 : index
    %3 = vector.load %arg4[%c0, %c0_1] : memref<32x64xf32, #tpu.memory_space<vmem>>, vector<32x64xf32>
    %c0_2 = arith.constant 0 : index
    %c0_3 = arith.constant 0 : index
    %4 = vector.load %arg7[%c0_2, %c0_3] : memref<32x32xf32, #tpu.memory_space<vmem>>, vector<32x32xf32>
    %c0_4 = arith.constant 0 : index
    %c0_5 = arith.constant 0 : index
    %c0_6 = arith.constant 0 : index
    %5 = vector.load %arg2[%c0_4, %c0_5, %c0_6] : memref<8x32x1xf32, #tpu.memory_space<vmem>>, vector<8x32x1xf32>
    %c0_7 = arith.constant 0 : index
    %c0_8 = arith.constant 0 : index
    %6 = vector.load %arg3[%c0_7, %c0_8] : memref<1x64xf32, #tpu.memory_space<vmem>>, vector<1x64xf32>
    %7 = vector.shape_cast %6 : vector<1x64xf32> to vector<1x1x64xf32>
    %8 = vector.broadcast %5 : vector<8x32x1xf32> to vector<8x32x64xf32>
    %9 = vector.broadcast %7 : vector<1x1x64xf32> to vector<8x32x64xf32>
    %10 = arith.mulf %8, %9 : vector<8x32x64xf32>
    %c0_9 = arith.constant 0 : index
    %c0_10 = arith.constant 0 : index
    %11 = vector.load %arg5[%c0_9, %c0_10] : memref<1x64xf32, #tpu.memory_space<vmem>>, vector<1x64xf32>
    %12 = vector.shape_cast %11 : vector<1x64xf32> to vector<1x1x64xf32>
    %13 = vector.broadcast %12 : vector<1x1x64xf32> to vector<8x32x64xf32>
    %14 = arith.addf %10, %13 : vector<8x32x64xf32>
    %c0_11 = arith.constant 0 : index
    %c0_12 = arith.constant 0 : index
    %15 = vector.load %arg6[%c0_11, %c0_12] : memref<1x32xf32, #tpu.memory_space<vmem>>, vector<1x32xf32>
    %16 = vector.shape_cast %15 : vector<1x32xf32> to vector<1x1x32xf32>
    %17 = vector.broadcast %5 : vector<8x32x1xf32> to vector<8x32x32xf32>
    %18 = vector.broadcast %16 : vector<1x1x32xf32> to vector<8x32x32xf32>
    %19 = arith.mulf %17, %18 : vector<8x32x32xf32>
    %c0_13 = arith.constant 0 : index
    %c0_14 = arith.constant 0 : index
    %20 = vector.load %arg8[%c0_13, %c0_14] : memref<1x32xf32, #tpu.memory_space<vmem>>, vector<1x32xf32>
    %21 = vector.shape_cast %20 : vector<1x32xf32> to vector<1x1x32xf32>
    %22 = vector.broadcast %21 : vector<1x1x32xf32> to vector<8x32x32xf32>
    %23 = arith.addf %19, %22 : vector<8x32x32xf32>
    %c0_15 = arith.constant 0 : index
    %c0_16 = arith.constant 0 : index
    %24 = vector.load %arg9[%c0_15, %c0_16] : memref<32x32xf32, #tpu.memory_space<vmem>>, vector<32x32xf32>
    %25 = vector.extract_strided_slice %14 {offsets = [0, 0, 0], sizes = [1, 32, 64], strides = [1, 1, 1]} : vector<8x32x64xf32> to vector<1x32x64xf32>
    %26 = vector.shape_cast %25 : vector<1x32x64xf32> to vector<32x64xf32>
    %cst = arith.constant dense<0.000000e+00> : vector<32x64xf32>
    %27 = tpu.matmul %24, %3, %cst {dimension_numbers = #tpu.dot_dimension_numbers<[1], [0], [0], [1], [0, 0, 1, 1], [], []>} : vector<32x32xf32>, vector<32x64xf32>, vector<32x64xf32> -> vector<32x64xf32>
    %28 = arith.addf %26, %27 : vector<32x64xf32>
    %29 = arith.negf %28 : vector<32x64xf32>
    %30 = math.exp %29 : vector<32x64xf32>
    %cst_17 = arith.constant 1.000000e+00 : f32
    %31 = vector.broadcast %cst_17 : f32 to vector<32x64xf32>
    %32 = arith.addf %31, %30 : vector<32x64xf32>
    %33 = arith.divf %31, %32 : vector<32x64xf32>
    %34 = vector.extract_strided_slice %33 {offsets = [0, 0], sizes = [32, 32], strides = [1, 1]} : vector<32x64xf32> to vector<32x32xf32>
    %35 = vector.extract_strided_slice %33 {offsets = [0, 32], sizes = [32, 32], strides = [1, 1]} : vector<32x64xf32> to vector<32x32xf32>
    %36 = vector.extract_strided_slice %34 {offsets = [0, 0], sizes = [4, 32], strides = [1, 1]} : vector<32x32xf32> to vector<4x32xf32>
    %37 = vector.extract_strided_slice %35 {offsets = [0, 0], sizes = [4, 32], strides = [1, 1]} : vector<32x32xf32> to vector<4x32xf32>
    %38 = vector.extract_strided_slice %34 {offsets = [4, 0], sizes = [4, 32], strides = [1, 1]} : vector<32x32xf32> to vector<4x32xf32>
    %39 = vector.extract_strided_slice %35 {offsets = [4, 0], sizes = [4, 32], strides = [1, 1]} : vector<32x32xf32> to vector<4x32xf32>
    %40 = vector.extract_strided_slice %34 {offsets = [8, 0], sizes = [4, 32], strides = [1, 1]} : vector<32x32xf32> to vector<4x32xf32>
    %41 = vector.extract_strided_slice %35 {offsets = [8, 0], sizes = [4, 32], strides = [1, 1]} : vector<32x32xf32> to vector<4x32xf32>
    %42 = vector.extract_strided_slice %34 {offsets = [12, 0], sizes = [4, 32], strides = [1, 1]} : vector<32x32xf32> to vector<4x32xf32>
    %43 = vector.extract_strided_slice %35 {offsets = [12, 0], sizes = [4, 32], strides = [1, 1]} : vector<32x32xf32> to vector<4x32xf32>
    %44 = tpu.concatenate %36, %37, %38, %39, %40, %41, %42, %43 in 0 : vector<4x32xf32>, vector<4x32xf32>, vector<4x32xf32>, vector<4x32xf32>, vector<4x32xf32>, vector<4x32xf32>, vector<4x32xf32>, vector<4x32xf32> -> vector<32x32xf32>
    %45 = vector.extract_strided_slice %34 {offsets = [16, 0], sizes = [4, 32], strides = [1, 1]} : vector<32x32xf32> to vector<4x32xf32>
    %46 = vector.extract_strided_slice %35 {offsets = [16, 0], sizes = [4, 32], strides = [1, 1]} : vector<32x32xf32> to vector<4x32xf32>
    %47 = vector.extract_strided_slice %34 {offsets = [20, 0], sizes = [4, 32], strides = [1, 1]} : vector<32x32xf32> to vector<4x32xf32>
    %48 = vector.extract_strided_slice %35 {offsets = [20, 0], sizes = [4, 32], strides = [1, 1]} : vector<32x32xf32> to vector<4x32xf32>
    %49 = vector.extract_strided_slice %34 {offsets = [24, 0], sizes = [4, 32], strides = [1, 1]} : vector<32x32xf32> to vector<4x32xf32>
    %50 = vector.extract_strided_slice %35 {offsets = [24, 0], sizes = [4, 32], strides = [1, 1]} : vector<32x32xf32> to vector<4x32xf32>
    %51 = vector.extract_strided_slice %34 {offsets = [28, 0], sizes = [4, 32], strides = [1, 1]} : vector<32x32xf32> to vector<4x32xf32>
    %52 = vector.extract_strided_slice %35 {offsets = [28, 0], sizes = [4, 32], strides = [1, 1]} : vector<32x32xf32> to vector<4x32xf32>
    %53 = tpu.concatenate %45, %46, %47, %48, %49, %50, %51, %52 in 0 : vector<4x32xf32>, vector<4x32xf32>, vector<4x32xf32>, vector<4x32xf32>, vector<4x32xf32>, vector<4x32xf32>, vector<4x32xf32>, vector<4x32xf32> -> vector<32x32xf32>
    %54 = vector.extract_strided_slice %23 {offsets = [0, 0, 0], sizes = [1, 32, 32], strides = [1, 1, 1]} : vector<8x32x32xf32> to vector<1x32x32xf32>
    %55 = vector.shape_cast %54 : vector<1x32x32xf32> to vector<32x32xf32>
    %56 = arith.mulf %44, %24 : vector<32x32xf32>
    %cst_18 = arith.constant dense<0.000000e+00> : vector<32x32xf32>
    %57 = tpu.matmul %56, %4, %cst_18 {dimension_numbers = #tpu.dot_dimension_numbers<[1], [0], [0], [1], [0, 0, 1, 1], [], []>} : vector<32x32xf32>, vector<32x32xf32>, vector<32x32xf32> -> vector<32x32xf32>
    %58 = arith.addf %55, %57 : vector<32x32xf32>
    %59 = math.tanh %58 : vector<32x32xf32>
    %60 = arith.mulf %53, %24 : vector<32x32xf32>
    %cst_19 = arith.constant 1.000000e+00 : f32
    %61 = vector.broadcast %cst_19 : f32 to vector<32x32xf32>
    %62 = arith.subf %61, %53 : vector<32x32xf32>
    %63 = arith.mulf %62, %59 : vector<32x32xf32>
    %64 = arith.addf %60, %63 : vector<32x32xf32>
    %65 = vector.extract_strided_slice %14 {offsets = [1, 0, 0], sizes = [1, 32, 64], strides = [1, 1, 1]} : vector<8x32x64xf32> to vector<1x32x64xf32>
    %66 = vector.shape_cast %65 : vector<1x32x64xf32> to vector<32x64xf32>
    %cst_20 = arith.constant dense<0.000000e+00> : vector<32x64xf32>
    %67 = tpu.matmul %64, %3, %cst_20 {dimension_numbers = #tpu.dot_dimension_numbers<[1], [0], [0], [1], [0, 0, 1, 1], [], []>} : vector<32x32xf32>, vector<32x64xf32>, vector<32x64xf32> -> vector<32x64xf32>
    %68 = arith.addf %66, %67 : vector<32x64xf32>
    %69 = arith.negf %68 : vector<32x64xf32>
    %70 = math.exp %69 : vector<32x64xf32>
    %cst_21 = arith.constant 1.000000e+00 : f32
    %71 = vector.broadcast %cst_21 : f32 to vector<32x64xf32>
    %72 = arith.addf %71, %70 : vector<32x64xf32>
    %73 = arith.divf %71, %72 : vector<32x64xf32>
    %74 = vector.extract_strided_slice %73 {offsets = [0, 0], sizes = [32, 32], strides = [1, 1]} : vector<32x64xf32> to vector<32x32xf32>
    %75 = vector.extract_strided_slice %73 {offsets = [0, 32], sizes = [32, 32], strides = [1, 1]} : vector<32x64xf32> to vector<32x32xf32>
    %76 = vector.extract_strided_slice %74 {offsets = [0, 0], sizes = [4, 32], strides = [1, 1]} : vector<32x32xf32> to vector<4x32xf32>
    %77 = vector.extract_strided_slice %75 {offsets = [0, 0], sizes = [4, 32], strides = [1, 1]} : vector<32x32xf32> to vector<4x32xf32>
    %78 = vector.extract_strided_slice %74 {offsets = [4, 0], sizes = [4, 32], strides = [1, 1]} : vector<32x32xf32> to vector<4x32xf32>
    %79 = vector.extract_strided_slice %75 {offsets = [4, 0], sizes = [4, 32], strides = [1, 1]} : vector<32x32xf32> to vector<4x32xf32>
    %80 = vector.extract_strided_slice %74 {offsets = [8, 0], sizes = [4, 32], strides = [1, 1]} : vector<32x32xf32> to vector<4x32xf32>
    %81 = vector.extract_strided_slice %75 {offsets = [8, 0], sizes = [4, 32], strides = [1, 1]} : vector<32x32xf32> to vector<4x32xf32>
    %82 = vector.extract_strided_slice %74 {offsets = [12, 0], sizes = [4, 32], strides = [1, 1]} : vector<32x32xf32> to vector<4x32xf32>
    %83 = vector.extract_strided_slice %75 {offsets = [12, 0], sizes = [4, 32], strides = [1, 1]} : vector<32x32xf32> to vector<4x32xf32>
    %84 = tpu.concatenate %76, %77, %78, %79, %80, %81, %82, %83 in 0 : vector<4x32xf32>, vector<4x32xf32>, vector<4x32xf32>, vector<4x32xf32>, vector<4x32xf32>, vector<4x32xf32>, vector<4x32xf32>, vector<4x32xf32> -> vector<32x32xf32>
    %85 = vector.extract_strided_slice %74 {offsets = [16, 0], sizes = [4, 32], strides = [1, 1]} : vector<32x32xf32> to vector<4x32xf32>
    %86 = vector.extract_strided_slice %75 {offsets = [16, 0], sizes = [4, 32], strides = [1, 1]} : vector<32x32xf32> to vector<4x32xf32>
    %87 = vector.extract_strided_slice %74 {offsets = [20, 0], sizes = [4, 32], strides = [1, 1]} : vector<32x32xf32> to vector<4x32xf32>
    %88 = vector.extract_strided_slice %75 {offsets = [20, 0], sizes = [4, 32], strides = [1, 1]} : vector<32x32xf32> to vector<4x32xf32>
    %89 = vector.extract_strided_slice %74 {offsets = [24, 0], sizes = [4, 32], strides = [1, 1]} : vector<32x32xf32> to vector<4x32xf32>
    %90 = vector.extract_strided_slice %75 {offsets = [24, 0], sizes = [4, 32], strides = [1, 1]} : vector<32x32xf32> to vector<4x32xf32>
    %91 = vector.extract_strided_slice %74 {offsets = [28, 0], sizes = [4, 32], strides = [1, 1]} : vector<32x32xf32> to vector<4x32xf32>
    %92 = vector.extract_strided_slice %75 {offsets = [28, 0], sizes = [4, 32], strides = [1, 1]} : vector<32x32xf32> to vector<4x32xf32>
    %93 = tpu.concatenate %85, %86, %87, %88, %89, %90, %91, %92 in 0 : vector<4x32xf32>, vector<4x32xf32>, vector<4x32xf32>, vector<4x32xf32>, vector<4x32xf32>, vector<4x32xf32>, vector<4x32xf32>, vector<4x32xf32> -> vector<32x32xf32>
    %94 = vector.extract_strided_slice %23 {offsets = [1, 0, 0], sizes = [1, 32, 32], strides = [1, 1, 1]} : vector<8x32x32xf32> to vector<1x32x32xf32>
    %95 = vector.shape_cast %94 : vector<1x32x32xf32> to vector<32x32xf32>
    %96 = arith.mulf %84, %64 : vector<32x32xf32>
    %cst_22 = arith.constant dense<0.000000e+00> : vector<32x32xf32>
    %97 = tpu.matmul %96, %4, %cst_22 {dimension_numbers = #tpu.dot_dimension_numbers<[1], [0], [0], [1], [0, 0, 1, 1], [], []>} : vector<32x32xf32>, vector<32x32xf32>, vector<32x32xf32> -> vector<32x32xf32>
    %98 = arith.addf %95, %97 : vector<32x32xf32>
    %99 = math.tanh %98 : vector<32x32xf32>
    %100 = arith.mulf %93, %64 : vector<32x32xf32>
    %cst_23 = arith.constant 1.000000e+00 : f32
    %101 = vector.broadcast %cst_23 : f32 to vector<32x32xf32>
    %102 = arith.subf %101, %93 : vector<32x32xf32>
    %103 = arith.mulf %102, %99 : vector<32x32xf32>
    %104 = arith.addf %100, %103 : vector<32x32xf32>
    %105 = vector.extract_strided_slice %14 {offsets = [2, 0, 0], sizes = [1, 32, 64], strides = [1, 1, 1]} : vector<8x32x64xf32> to vector<1x32x64xf32>
    %106 = vector.shape_cast %105 : vector<1x32x64xf32> to vector<32x64xf32>
    %cst_24 = arith.constant dense<0.000000e+00> : vector<32x64xf32>
    %107 = tpu.matmul %104, %3, %cst_24 {dimension_numbers = #tpu.dot_dimension_numbers<[1], [0], [0], [1], [0, 0, 1, 1], [], []>} : vector<32x32xf32>, vector<32x64xf32>, vector<32x64xf32> -> vector<32x64xf32>
    %108 = arith.addf %106, %107 : vector<32x64xf32>
    %109 = arith.negf %108 : vector<32x64xf32>
    %110 = math.exp %109 : vector<32x64xf32>
    %cst_25 = arith.constant 1.000000e+00 : f32
    %111 = vector.broadcast %cst_25 : f32 to vector<32x64xf32>
    %112 = arith.addf %111, %110 : vector<32x64xf32>
    %113 = arith.divf %111, %112 : vector<32x64xf32>
    %114 = vector.extract_strided_slice %113 {offsets = [0, 0], sizes = [32, 32], strides = [1, 1]} : vector<32x64xf32> to vector<32x32xf32>
    %115 = vector.extract_strided_slice %113 {offsets = [0, 32], sizes = [32, 32], strides = [1, 1]} : vector<32x64xf32> to vector<32x32xf32>
    %116 = vector.extract_strided_slice %114 {offsets = [0, 0], sizes = [4, 32], strides = [1, 1]} : vector<32x32xf32> to vector<4x32xf32>
    %117 = vector.extract_strided_slice %115 {offsets = [0, 0], sizes = [4, 32], strides = [1, 1]} : vector<32x32xf32> to vector<4x32xf32>
    %118 = vector.extract_strided_slice %114 {offsets = [4, 0], sizes = [4, 32], strides = [1, 1]} : vector<32x32xf32> to vector<4x32xf32>
    %119 = vector.extract_strided_slice %115 {offsets = [4, 0], sizes = [4, 32], strides = [1, 1]} : vector<32x32xf32> to vector<4x32xf32>
    %120 = vector.extract_strided_slice %114 {offsets = [8, 0], sizes = [4, 32], strides = [1, 1]} : vector<32x32xf32> to vector<4x32xf32>
    %121 = vector.extract_strided_slice %115 {offsets = [8, 0], sizes = [4, 32], strides = [1, 1]} : vector<32x32xf32> to vector<4x32xf32>
    %122 = vector.extract_strided_slice %114 {offsets = [12, 0], sizes = [4, 32], strides = [1, 1]} : vector<32x32xf32> to vector<4x32xf32>
    %123 = vector.extract_strided_slice %115 {offsets = [12, 0], sizes = [4, 32], strides = [1, 1]} : vector<32x32xf32> to vector<4x32xf32>
    %124 = tpu.concatenate %116, %117, %118, %119, %120, %121, %122, %123 in 0 : vector<4x32xf32>, vector<4x32xf32>, vector<4x32xf32>, vector<4x32xf32>, vector<4x32xf32>, vector<4x32xf32>, vector<4x32xf32>, vector<4x32xf32> -> vector<32x32xf32>
    %125 = vector.extract_strided_slice %114 {offsets = [16, 0], sizes = [4, 32], strides = [1, 1]} : vector<32x32xf32> to vector<4x32xf32>
    %126 = vector.extract_strided_slice %115 {offsets = [16, 0], sizes = [4, 32], strides = [1, 1]} : vector<32x32xf32> to vector<4x32xf32>
    %127 = vector.extract_strided_slice %114 {offsets = [20, 0], sizes = [4, 32], strides = [1, 1]} : vector<32x32xf32> to vector<4x32xf32>
    %128 = vector.extract_strided_slice %115 {offsets = [20, 0], sizes = [4, 32], strides = [1, 1]} : vector<32x32xf32> to vector<4x32xf32>
    %129 = vector.extract_strided_slice %114 {offsets = [24, 0], sizes = [4, 32], strides = [1, 1]} : vector<32x32xf32> to vector<4x32xf32>
    %130 = vector.extract_strided_slice %115 {offsets = [24, 0], sizes = [4, 32], strides = [1, 1]} : vector<32x32xf32> to vector<4x32xf32>
    %131 = vector.extract_strided_slice %114 {offsets = [28, 0], sizes = [4, 32], strides = [1, 1]} : vector<32x32xf32> to vector<4x32xf32>
    %132 = vector.extract_strided_slice %115 {offsets = [28, 0], sizes = [4, 32], strides = [1, 1]} : vector<32x32xf32> to vector<4x32xf32>
    %133 = tpu.concatenate %125, %126, %127, %128, %129, %130, %131, %132 in 0 : vector<4x32xf32>, vector<4x32xf32>, vector<4x32xf32>, vector<4x32xf32>, vector<4x32xf32>, vector<4x32xf32>, vector<4x32xf32>, vector<4x32xf32> -> vector<32x32xf32>
    %134 = vector.extract_strided_slice %23 {offsets = [2, 0, 0], sizes = [1, 32, 32], strides = [1, 1, 1]} : vector<8x32x32xf32> to vector<1x32x32xf32>
    %135 = vector.shape_cast %134 : vector<1x32x32xf32> to vector<32x32xf32>
    %136 = arith.mulf %124, %104 : vector<32x32xf32>
    %cst_26 = arith.constant dense<0.000000e+00> : vector<32x32xf32>
    %137 = tpu.matmul %136, %4, %cst_26 {dimension_numbers = #tpu.dot_dimension_numbers<[1], [0], [0], [1], [0, 0, 1, 1], [], []>} : vector<32x32xf32>, vector<32x32xf32>, vector<32x32xf32> -> vector<32x32xf32>
    %138 = arith.addf %135, %137 : vector<32x32xf32>
    %139 = math.tanh %138 : vector<32x32xf32>
    %140 = arith.mulf %133, %104 : vector<32x32xf32>
    %cst_27 = arith.constant 1.000000e+00 : f32
    %141 = vector.broadcast %cst_27 : f32 to vector<32x32xf32>
    %142 = arith.subf %141, %133 : vector<32x32xf32>
    %143 = arith.mulf %142, %139 : vector<32x32xf32>
    %144 = arith.addf %140, %143 : vector<32x32xf32>
    %145 = vector.extract_strided_slice %14 {offsets = [3, 0, 0], sizes = [1, 32, 64], strides = [1, 1, 1]} : vector<8x32x64xf32> to vector<1x32x64xf32>
    %146 = vector.shape_cast %145 : vector<1x32x64xf32> to vector<32x64xf32>
    %cst_28 = arith.constant dense<0.000000e+00> : vector<32x64xf32>
    %147 = tpu.matmul %144, %3, %cst_28 {dimension_numbers = #tpu.dot_dimension_numbers<[1], [0], [0], [1], [0, 0, 1, 1], [], []>} : vector<32x32xf32>, vector<32x64xf32>, vector<32x64xf32> -> vector<32x64xf32>
    %148 = arith.addf %146, %147 : vector<32x64xf32>
    %149 = arith.negf %148 : vector<32x64xf32>
    %150 = math.exp %149 : vector<32x64xf32>
    %cst_29 = arith.constant 1.000000e+00 : f32
    %151 = vector.broadcast %cst_29 : f32 to vector<32x64xf32>
    %152 = arith.addf %151, %150 : vector<32x64xf32>
    %153 = arith.divf %151, %152 : vector<32x64xf32>
    %154 = vector.extract_strided_slice %153 {offsets = [0, 0], sizes = [32, 32], strides = [1, 1]} : vector<32x64xf32> to vector<32x32xf32>
    %155 = vector.extract_strided_slice %153 {offsets = [0, 32], sizes = [32, 32], strides = [1, 1]} : vector<32x64xf32> to vector<32x32xf32>
    %156 = vector.extract_strided_slice %154 {offsets = [0, 0], sizes = [4, 32], strides = [1, 1]} : vector<32x32xf32> to vector<4x32xf32>
    %157 = vector.extract_strided_slice %155 {offsets = [0, 0], sizes = [4, 32], strides = [1, 1]} : vector<32x32xf32> to vector<4x32xf32>
    %158 = vector.extract_strided_slice %154 {offsets = [4, 0], sizes = [4, 32], strides = [1, 1]} : vector<32x32xf32> to vector<4x32xf32>
    %159 = vector.extract_strided_slice %155 {offsets = [4, 0], sizes = [4, 32], strides = [1, 1]} : vector<32x32xf32> to vector<4x32xf32>
    %160 = vector.extract_strided_slice %154 {offsets = [8, 0], sizes = [4, 32], strides = [1, 1]} : vector<32x32xf32> to vector<4x32xf32>
    %161 = vector.extract_strided_slice %155 {offsets = [8, 0], sizes = [4, 32], strides = [1, 1]} : vector<32x32xf32> to vector<4x32xf32>
    %162 = vector.extract_strided_slice %154 {offsets = [12, 0], sizes = [4, 32], strides = [1, 1]} : vector<32x32xf32> to vector<4x32xf32>
    %163 = vector.extract_strided_slice %155 {offsets = [12, 0], sizes = [4, 32], strides = [1, 1]} : vector<32x32xf32> to vector<4x32xf32>
    %164 = tpu.concatenate %156, %157, %158, %159, %160, %161, %162, %163 in 0 : vector<4x32xf32>, vector<4x32xf32>, vector<4x32xf32>, vector<4x32xf32>, vector<4x32xf32>, vector<4x32xf32>, vector<4x32xf32>, vector<4x32xf32> -> vector<32x32xf32>
    %165 = vector.extract_strided_slice %154 {offsets = [16, 0], sizes = [4, 32], strides = [1, 1]} : vector<32x32xf32> to vector<4x32xf32>
    %166 = vector.extract_strided_slice %155 {offsets = [16, 0], sizes = [4, 32], strides = [1, 1]} : vector<32x32xf32> to vector<4x32xf32>
    %167 = vector.extract_strided_slice %154 {offsets = [20, 0], sizes = [4, 32], strides = [1, 1]} : vector<32x32xf32> to vector<4x32xf32>
    %168 = vector.extract_strided_slice %155 {offsets = [20, 0], sizes = [4, 32], strides = [1, 1]} : vector<32x32xf32> to vector<4x32xf32>
    %169 = vector.extract_strided_slice %154 {offsets = [24, 0], sizes = [4, 32], strides = [1, 1]} : vector<32x32xf32> to vector<4x32xf32>
    %170 = vector.extract_strided_slice %155 {offsets = [24, 0], sizes = [4, 32], strides = [1, 1]} : vector<32x32xf32> to vector<4x32xf32>
    %171 = vector.extract_strided_slice %154 {offsets = [28, 0], sizes = [4, 32], strides = [1, 1]} : vector<32x32xf32> to vector<4x32xf32>
    %172 = vector.extract_strided_slice %155 {offsets = [28, 0], sizes = [4, 32], strides = [1, 1]} : vector<32x32xf32> to vector<4x32xf32>
    %173 = tpu.concatenate %165, %166, %167, %168, %169, %170, %171, %172 in 0 : vector<4x32xf32>, vector<4x32xf32>, vector<4x32xf32>, vector<4x32xf32>, vector<4x32xf32>, vector<4x32xf32>, vector<4x32xf32>, vector<4x32xf32> -> vector<32x32xf32>
    %174 = vector.extract_strided_slice %23 {offsets = [3, 0, 0], sizes = [1, 32, 32], strides = [1, 1, 1]} : vector<8x32x32xf32> to vector<1x32x32xf32>
    %175 = vector.shape_cast %174 : vector<1x32x32xf32> to vector<32x32xf32>
    %176 = arith.mulf %164, %144 : vector<32x32xf32>
    %cst_30 = arith.constant dense<0.000000e+00> : vector<32x32xf32>
    %177 = tpu.matmul %176, %4, %cst_30 {dimension_numbers = #tpu.dot_dimension_numbers<[1], [0], [0], [1], [0, 0, 1, 1], [], []>} : vector<32x32xf32>, vector<32x32xf32>, vector<32x32xf32> -> vector<32x32xf32>
    %178 = arith.addf %175, %177 : vector<32x32xf32>
    %179 = math.tanh %178 : vector<32x32xf32>
    %180 = arith.mulf %173, %144 : vector<32x32xf32>
    %cst_31 = arith.constant 1.000000e+00 : f32
    %181 = vector.broadcast %cst_31 : f32 to vector<32x32xf32>
    %182 = arith.subf %181, %173 : vector<32x32xf32>
    %183 = arith.mulf %182, %179 : vector<32x32xf32>
    %184 = arith.addf %180, %183 : vector<32x32xf32>
    %185 = vector.extract_strided_slice %14 {offsets = [4, 0, 0], sizes = [1, 32, 64], strides = [1, 1, 1]} : vector<8x32x64xf32> to vector<1x32x64xf32>
    %186 = vector.shape_cast %185 : vector<1x32x64xf32> to vector<32x64xf32>
    %cst_32 = arith.constant dense<0.000000e+00> : vector<32x64xf32>
    %187 = tpu.matmul %184, %3, %cst_32 {dimension_numbers = #tpu.dot_dimension_numbers<[1], [0], [0], [1], [0, 0, 1, 1], [], []>} : vector<32x32xf32>, vector<32x64xf32>, vector<32x64xf32> -> vector<32x64xf32>
    %188 = arith.addf %186, %187 : vector<32x64xf32>
    %189 = arith.negf %188 : vector<32x64xf32>
    %190 = math.exp %189 : vector<32x64xf32>
    %cst_33 = arith.constant 1.000000e+00 : f32
    %191 = vector.broadcast %cst_33 : f32 to vector<32x64xf32>
    %192 = arith.addf %191, %190 : vector<32x64xf32>
    %193 = arith.divf %191, %192 : vector<32x64xf32>
    %194 = vector.extract_strided_slice %193 {offsets = [0, 0], sizes = [32, 32], strides = [1, 1]} : vector<32x64xf32> to vector<32x32xf32>
    %195 = vector.extract_strided_slice %193 {offsets = [0, 32], sizes = [32, 32], strides = [1, 1]} : vector<32x64xf32> to vector<32x32xf32>
    %196 = vector.extract_strided_slice %194 {offsets = [0, 0], sizes = [4, 32], strides = [1, 1]} : vector<32x32xf32> to vector<4x32xf32>
    %197 = vector.extract_strided_slice %195 {offsets = [0, 0], sizes = [4, 32], strides = [1, 1]} : vector<32x32xf32> to vector<4x32xf32>
    %198 = vector.extract_strided_slice %194 {offsets = [4, 0], sizes = [4, 32], strides = [1, 1]} : vector<32x32xf32> to vector<4x32xf32>
    %199 = vector.extract_strided_slice %195 {offsets = [4, 0], sizes = [4, 32], strides = [1, 1]} : vector<32x32xf32> to vector<4x32xf32>
    %200 = vector.extract_strided_slice %194 {offsets = [8, 0], sizes = [4, 32], strides = [1, 1]} : vector<32x32xf32> to vector<4x32xf32>
    %201 = vector.extract_strided_slice %195 {offsets = [8, 0], sizes = [4, 32], strides = [1, 1]} : vector<32x32xf32> to vector<4x32xf32>
    %202 = vector.extract_strided_slice %194 {offsets = [12, 0], sizes = [4, 32], strides = [1, 1]} : vector<32x32xf32> to vector<4x32xf32>
    %203 = vector.extract_strided_slice %195 {offsets = [12, 0], sizes = [4, 32], strides = [1, 1]} : vector<32x32xf32> to vector<4x32xf32>
    %204 = tpu.concatenate %196, %197, %198, %199, %200, %201, %202, %203 in 0 : vector<4x32xf32>, vector<4x32xf32>, vector<4x32xf32>, vector<4x32xf32>, vector<4x32xf32>, vector<4x32xf32>, vector<4x32xf32>, vector<4x32xf32> -> vector<32x32xf32>
    %205 = vector.extract_strided_slice %194 {offsets = [16, 0], sizes = [4, 32], strides = [1, 1]} : vector<32x32xf32> to vector<4x32xf32>
    %206 = vector.extract_strided_slice %195 {offsets = [16, 0], sizes = [4, 32], strides = [1, 1]} : vector<32x32xf32> to vector<4x32xf32>
    %207 = vector.extract_strided_slice %194 {offsets = [20, 0], sizes = [4, 32], strides = [1, 1]} : vector<32x32xf32> to vector<4x32xf32>
    %208 = vector.extract_strided_slice %195 {offsets = [20, 0], sizes = [4, 32], strides = [1, 1]} : vector<32x32xf32> to vector<4x32xf32>
    %209 = vector.extract_strided_slice %194 {offsets = [24, 0], sizes = [4, 32], strides = [1, 1]} : vector<32x32xf32> to vector<4x32xf32>
    %210 = vector.extract_strided_slice %195 {offsets = [24, 0], sizes = [4, 32], strides = [1, 1]} : vector<32x32xf32> to vector<4x32xf32>
    %211 = vector.extract_strided_slice %194 {offsets = [28, 0], sizes = [4, 32], strides = [1, 1]} : vector<32x32xf32> to vector<4x32xf32>
    %212 = vector.extract_strided_slice %195 {offsets = [28, 0], sizes = [4, 32], strides = [1, 1]} : vector<32x32xf32> to vector<4x32xf32>
    %213 = tpu.concatenate %205, %206, %207, %208, %209, %210, %211, %212 in 0 : vector<4x32xf32>, vector<4x32xf32>, vector<4x32xf32>, vector<4x32xf32>, vector<4x32xf32>, vector<4x32xf32>, vector<4x32xf32>, vector<4x32xf32> -> vector<32x32xf32>
    %214 = vector.extract_strided_slice %23 {offsets = [4, 0, 0], sizes = [1, 32, 32], strides = [1, 1, 1]} : vector<8x32x32xf32> to vector<1x32x32xf32>
    %215 = vector.shape_cast %214 : vector<1x32x32xf32> to vector<32x32xf32>
    %216 = arith.mulf %204, %184 : vector<32x32xf32>
    %cst_34 = arith.constant dense<0.000000e+00> : vector<32x32xf32>
    %217 = tpu.matmul %216, %4, %cst_34 {dimension_numbers = #tpu.dot_dimension_numbers<[1], [0], [0], [1], [0, 0, 1, 1], [], []>} : vector<32x32xf32>, vector<32x32xf32>, vector<32x32xf32> -> vector<32x32xf32>
    %218 = arith.addf %215, %217 : vector<32x32xf32>
    %219 = math.tanh %218 : vector<32x32xf32>
    %220 = arith.mulf %213, %184 : vector<32x32xf32>
    %cst_35 = arith.constant 1.000000e+00 : f32
    %221 = vector.broadcast %cst_35 : f32 to vector<32x32xf32>
    %222 = arith.subf %221, %213 : vector<32x32xf32>
    %223 = arith.mulf %222, %219 : vector<32x32xf32>
    %224 = arith.addf %220, %223 : vector<32x32xf32>
    %225 = vector.extract_strided_slice %14 {offsets = [5, 0, 0], sizes = [1, 32, 64], strides = [1, 1, 1]} : vector<8x32x64xf32> to vector<1x32x64xf32>
    %226 = vector.shape_cast %225 : vector<1x32x64xf32> to vector<32x64xf32>
    %cst_36 = arith.constant dense<0.000000e+00> : vector<32x64xf32>
    %227 = tpu.matmul %224, %3, %cst_36 {dimension_numbers = #tpu.dot_dimension_numbers<[1], [0], [0], [1], [0, 0, 1, 1], [], []>} : vector<32x32xf32>, vector<32x64xf32>, vector<32x64xf32> -> vector<32x64xf32>
    %228 = arith.addf %226, %227 : vector<32x64xf32>
    %229 = arith.negf %228 : vector<32x64xf32>
    %230 = math.exp %229 : vector<32x64xf32>
    %cst_37 = arith.constant 1.000000e+00 : f32
    %231 = vector.broadcast %cst_37 : f32 to vector<32x64xf32>
    %232 = arith.addf %231, %230 : vector<32x64xf32>
    %233 = arith.divf %231, %232 : vector<32x64xf32>
    %234 = vector.extract_strided_slice %233 {offsets = [0, 0], sizes = [32, 32], strides = [1, 1]} : vector<32x64xf32> to vector<32x32xf32>
    %235 = vector.extract_strided_slice %233 {offsets = [0, 32], sizes = [32, 32], strides = [1, 1]} : vector<32x64xf32> to vector<32x32xf32>
    %236 = vector.extract_strided_slice %234 {offsets = [0, 0], sizes = [4, 32], strides = [1, 1]} : vector<32x32xf32> to vector<4x32xf32>
    %237 = vector.extract_strided_slice %235 {offsets = [0, 0], sizes = [4, 32], strides = [1, 1]} : vector<32x32xf32> to vector<4x32xf32>
    %238 = vector.extract_strided_slice %234 {offsets = [4, 0], sizes = [4, 32], strides = [1, 1]} : vector<32x32xf32> to vector<4x32xf32>
    %239 = vector.extract_strided_slice %235 {offsets = [4, 0], sizes = [4, 32], strides = [1, 1]} : vector<32x32xf32> to vector<4x32xf32>
    %240 = vector.extract_strided_slice %234 {offsets = [8, 0], sizes = [4, 32], strides = [1, 1]} : vector<32x32xf32> to vector<4x32xf32>
    %241 = vector.extract_strided_slice %235 {offsets = [8, 0], sizes = [4, 32], strides = [1, 1]} : vector<32x32xf32> to vector<4x32xf32>
    %242 = vector.extract_strided_slice %234 {offsets = [12, 0], sizes = [4, 32], strides = [1, 1]} : vector<32x32xf32> to vector<4x32xf32>
    %243 = vector.extract_strided_slice %235 {offsets = [12, 0], sizes = [4, 32], strides = [1, 1]} : vector<32x32xf32> to vector<4x32xf32>
    %244 = tpu.concatenate %236, %237, %238, %239, %240, %241, %242, %243 in 0 : vector<4x32xf32>, vector<4x32xf32>, vector<4x32xf32>, vector<4x32xf32>, vector<4x32xf32>, vector<4x32xf32>, vector<4x32xf32>, vector<4x32xf32> -> vector<32x32xf32>
    %245 = vector.extract_strided_slice %234 {offsets = [16, 0], sizes = [4, 32], strides = [1, 1]} : vector<32x32xf32> to vector<4x32xf32>
    %246 = vector.extract_strided_slice %235 {offsets = [16, 0], sizes = [4, 32], strides = [1, 1]} : vector<32x32xf32> to vector<4x32xf32>
    %247 = vector.extract_strided_slice %234 {offsets = [20, 0], sizes = [4, 32], strides = [1, 1]} : vector<32x32xf32> to vector<4x32xf32>
    %248 = vector.extract_strided_slice %235 {offsets = [20, 0], sizes = [4, 32], strides = [1, 1]} : vector<32x32xf32> to vector<4x32xf32>
    %249 = vector.extract_strided_slice %234 {offsets = [24, 0], sizes = [4, 32], strides = [1, 1]} : vector<32x32xf32> to vector<4x32xf32>
    %250 = vector.extract_strided_slice %235 {offsets = [24, 0], sizes = [4, 32], strides = [1, 1]} : vector<32x32xf32> to vector<4x32xf32>
    %251 = vector.extract_strided_slice %234 {offsets = [28, 0], sizes = [4, 32], strides = [1, 1]} : vector<32x32xf32> to vector<4x32xf32>
    %252 = vector.extract_strided_slice %235 {offsets = [28, 0], sizes = [4, 32], strides = [1, 1]} : vector<32x32xf32> to vector<4x32xf32>
    %253 = tpu.concatenate %245, %246, %247, %248, %249, %250, %251, %252 in 0 : vector<4x32xf32>, vector<4x32xf32>, vector<4x32xf32>, vector<4x32xf32>, vector<4x32xf32>, vector<4x32xf32>, vector<4x32xf32>, vector<4x32xf32> -> vector<32x32xf32>
    %254 = vector.extract_strided_slice %23 {offsets = [5, 0, 0], sizes = [1, 32, 32], strides = [1, 1, 1]} : vector<8x32x32xf32> to vector<1x32x32xf32>
    %255 = vector.shape_cast %254 : vector<1x32x32xf32> to vector<32x32xf32>
    %256 = arith.mulf %244, %224 : vector<32x32xf32>
    %cst_38 = arith.constant dense<0.000000e+00> : vector<32x32xf32>
    %257 = tpu.matmul %256, %4, %cst_38 {dimension_numbers = #tpu.dot_dimension_numbers<[1], [0], [0], [1], [0, 0, 1, 1], [], []>} : vector<32x32xf32>, vector<32x32xf32>, vector<32x32xf32> -> vector<32x32xf32>
    %258 = arith.addf %255, %257 : vector<32x32xf32>
    %259 = math.tanh %258 : vector<32x32xf32>
    %260 = arith.mulf %253, %224 : vector<32x32xf32>
    %cst_39 = arith.constant 1.000000e+00 : f32
    %261 = vector.broadcast %cst_39 : f32 to vector<32x32xf32>
    %262 = arith.subf %261, %253 : vector<32x32xf32>
    %263 = arith.mulf %262, %259 : vector<32x32xf32>
    %264 = arith.addf %260, %263 : vector<32x32xf32>
    %265 = vector.extract_strided_slice %14 {offsets = [6, 0, 0], sizes = [1, 32, 64], strides = [1, 1, 1]} : vector<8x32x64xf32> to vector<1x32x64xf32>
    %266 = vector.shape_cast %265 : vector<1x32x64xf32> to vector<32x64xf32>
    %cst_40 = arith.constant dense<0.000000e+00> : vector<32x64xf32>
    %267 = tpu.matmul %264, %3, %cst_40 {dimension_numbers = #tpu.dot_dimension_numbers<[1], [0], [0], [1], [0, 0, 1, 1], [], []>} : vector<32x32xf32>, vector<32x64xf32>, vector<32x64xf32> -> vector<32x64xf32>
    %268 = arith.addf %266, %267 : vector<32x64xf32>
    %269 = arith.negf %268 : vector<32x64xf32>
    %270 = math.exp %269 : vector<32x64xf32>
    %cst_41 = arith.constant 1.000000e+00 : f32
    %271 = vector.broadcast %cst_41 : f32 to vector<32x64xf32>
    %272 = arith.addf %271, %270 : vector<32x64xf32>
    %273 = arith.divf %271, %272 : vector<32x64xf32>
    %274 = vector.extract_strided_slice %273 {offsets = [0, 0], sizes = [32, 32], strides = [1, 1]} : vector<32x64xf32> to vector<32x32xf32>
    %275 = vector.extract_strided_slice %273 {offsets = [0, 32], sizes = [32, 32], strides = [1, 1]} : vector<32x64xf32> to vector<32x32xf32>
    %276 = vector.extract_strided_slice %274 {offsets = [0, 0], sizes = [4, 32], strides = [1, 1]} : vector<32x32xf32> to vector<4x32xf32>
    %277 = vector.extract_strided_slice %275 {offsets = [0, 0], sizes = [4, 32], strides = [1, 1]} : vector<32x32xf32> to vector<4x32xf32>
    %278 = vector.extract_strided_slice %274 {offsets = [4, 0], sizes = [4, 32], strides = [1, 1]} : vector<32x32xf32> to vector<4x32xf32>
    %279 = vector.extract_strided_slice %275 {offsets = [4, 0], sizes = [4, 32], strides = [1, 1]} : vector<32x32xf32> to vector<4x32xf32>
    %280 = vector.extract_strided_slice %274 {offsets = [8, 0], sizes = [4, 32], strides = [1, 1]} : vector<32x32xf32> to vector<4x32xf32>
    %281 = vector.extract_strided_slice %275 {offsets = [8, 0], sizes = [4, 32], strides = [1, 1]} : vector<32x32xf32> to vector<4x32xf32>
    %282 = vector.extract_strided_slice %274 {offsets = [12, 0], sizes = [4, 32], strides = [1, 1]} : vector<32x32xf32> to vector<4x32xf32>
    %283 = vector.extract_strided_slice %275 {offsets = [12, 0], sizes = [4, 32], strides = [1, 1]} : vector<32x32xf32> to vector<4x32xf32>
    %284 = tpu.concatenate %276, %277, %278, %279, %280, %281, %282, %283 in 0 : vector<4x32xf32>, vector<4x32xf32>, vector<4x32xf32>, vector<4x32xf32>, vector<4x32xf32>, vector<4x32xf32>, vector<4x32xf32>, vector<4x32xf32> -> vector<32x32xf32>
    %285 = vector.extract_strided_slice %274 {offsets = [16, 0], sizes = [4, 32], strides = [1, 1]} : vector<32x32xf32> to vector<4x32xf32>
    %286 = vector.extract_strided_slice %275 {offsets = [16, 0], sizes = [4, 32], strides = [1, 1]} : vector<32x32xf32> to vector<4x32xf32>
    %287 = vector.extract_strided_slice %274 {offsets = [20, 0], sizes = [4, 32], strides = [1, 1]} : vector<32x32xf32> to vector<4x32xf32>
    %288 = vector.extract_strided_slice %275 {offsets = [20, 0], sizes = [4, 32], strides = [1, 1]} : vector<32x32xf32> to vector<4x32xf32>
    %289 = vector.extract_strided_slice %274 {offsets = [24, 0], sizes = [4, 32], strides = [1, 1]} : vector<32x32xf32> to vector<4x32xf32>
    %290 = vector.extract_strided_slice %275 {offsets = [24, 0], sizes = [4, 32], strides = [1, 1]} : vector<32x32xf32> to vector<4x32xf32>
    %291 = vector.extract_strided_slice %274 {offsets = [28, 0], sizes = [4, 32], strides = [1, 1]} : vector<32x32xf32> to vector<4x32xf32>
    %292 = vector.extract_strided_slice %275 {offsets = [28, 0], sizes = [4, 32], strides = [1, 1]} : vector<32x32xf32> to vector<4x32xf32>
    %293 = tpu.concatenate %285, %286, %287, %288, %289, %290, %291, %292 in 0 : vector<4x32xf32>, vector<4x32xf32>, vector<4x32xf32>, vector<4x32xf32>, vector<4x32xf32>, vector<4x32xf32>, vector<4x32xf32>, vector<4x32xf32> -> vector<32x32xf32>
    %294 = vector.extract_strided_slice %23 {offsets = [6, 0, 0], sizes = [1, 32, 32], strides = [1, 1, 1]} : vector<8x32x32xf32> to vector<1x32x32xf32>
    %295 = vector.shape_cast %294 : vector<1x32x32xf32> to vector<32x32xf32>
    %296 = arith.mulf %284, %264 : vector<32x32xf32>
    %cst_42 = arith.constant dense<0.000000e+00> : vector<32x32xf32>
    %297 = tpu.matmul %296, %4, %cst_42 {dimension_numbers = #tpu.dot_dimension_numbers<[1], [0], [0], [1], [0, 0, 1, 1], [], []>} : vector<32x32xf32>, vector<32x32xf32>, vector<32x32xf32> -> vector<32x32xf32>
    %298 = arith.addf %295, %297 : vector<32x32xf32>
    %299 = math.tanh %298 : vector<32x32xf32>
    %300 = arith.mulf %293, %264 : vector<32x32xf32>
    %cst_43 = arith.constant 1.000000e+00 : f32
    %301 = vector.broadcast %cst_43 : f32 to vector<32x32xf32>
    %302 = arith.subf %301, %293 : vector<32x32xf32>
    %303 = arith.mulf %302, %299 : vector<32x32xf32>
    %304 = arith.addf %300, %303 : vector<32x32xf32>
    %305 = vector.extract_strided_slice %14 {offsets = [7, 0, 0], sizes = [1, 32, 64], strides = [1, 1, 1]} : vector<8x32x64xf32> to vector<1x32x64xf32>
    %306 = vector.shape_cast %305 : vector<1x32x64xf32> to vector<32x64xf32>
    %cst_44 = arith.constant dense<0.000000e+00> : vector<32x64xf32>
    %307 = tpu.matmul %304, %3, %cst_44 {dimension_numbers = #tpu.dot_dimension_numbers<[1], [0], [0], [1], [0, 0, 1, 1], [], []>} : vector<32x32xf32>, vector<32x64xf32>, vector<32x64xf32> -> vector<32x64xf32>
    %308 = arith.addf %306, %307 : vector<32x64xf32>
    %309 = arith.negf %308 : vector<32x64xf32>
    %310 = math.exp %309 : vector<32x64xf32>
    %cst_45 = arith.constant 1.000000e+00 : f32
    %311 = vector.broadcast %cst_45 : f32 to vector<32x64xf32>
    %312 = arith.addf %311, %310 : vector<32x64xf32>
    %313 = arith.divf %311, %312 : vector<32x64xf32>
    %314 = vector.extract_strided_slice %313 {offsets = [0, 0], sizes = [32, 32], strides = [1, 1]} : vector<32x64xf32> to vector<32x32xf32>
    %315 = vector.extract_strided_slice %313 {offsets = [0, 32], sizes = [32, 32], strides = [1, 1]} : vector<32x64xf32> to vector<32x32xf32>
    %316 = vector.extract_strided_slice %314 {offsets = [0, 0], sizes = [4, 32], strides = [1, 1]} : vector<32x32xf32> to vector<4x32xf32>
    %317 = vector.extract_strided_slice %315 {offsets = [0, 0], sizes = [4, 32], strides = [1, 1]} : vector<32x32xf32> to vector<4x32xf32>
    %318 = vector.extract_strided_slice %314 {offsets = [4, 0], sizes = [4, 32], strides = [1, 1]} : vector<32x32xf32> to vector<4x32xf32>
    %319 = vector.extract_strided_slice %315 {offsets = [4, 0], sizes = [4, 32], strides = [1, 1]} : vector<32x32xf32> to vector<4x32xf32>
    %320 = vector.extract_strided_slice %314 {offsets = [8, 0], sizes = [4, 32], strides = [1, 1]} : vector<32x32xf32> to vector<4x32xf32>
    %321 = vector.extract_strided_slice %315 {offsets = [8, 0], sizes = [4, 32], strides = [1, 1]} : vector<32x32xf32> to vector<4x32xf32>
    %322 = vector.extract_strided_slice %314 {offsets = [12, 0], sizes = [4, 32], strides = [1, 1]} : vector<32x32xf32> to vector<4x32xf32>
    %323 = vector.extract_strided_slice %315 {offsets = [12, 0], sizes = [4, 32], strides = [1, 1]} : vector<32x32xf32> to vector<4x32xf32>
    %324 = tpu.concatenate %316, %317, %318, %319, %320, %321, %322, %323 in 0 : vector<4x32xf32>, vector<4x32xf32>, vector<4x32xf32>, vector<4x32xf32>, vector<4x32xf32>, vector<4x32xf32>, vector<4x32xf32>, vector<4x32xf32> -> vector<32x32xf32>
    %325 = vector.extract_strided_slice %314 {offsets = [16, 0], sizes = [4, 32], strides = [1, 1]} : vector<32x32xf32> to vector<4x32xf32>
    %326 = vector.extract_strided_slice %315 {offsets = [16, 0], sizes = [4, 32], strides = [1, 1]} : vector<32x32xf32> to vector<4x32xf32>
    %327 = vector.extract_strided_slice %314 {offsets = [20, 0], sizes = [4, 32], strides = [1, 1]} : vector<32x32xf32> to vector<4x32xf32>
    %328 = vector.extract_strided_slice %315 {offsets = [20, 0], sizes = [4, 32], strides = [1, 1]} : vector<32x32xf32> to vector<4x32xf32>
    %329 = vector.extract_strided_slice %314 {offsets = [24, 0], sizes = [4, 32], strides = [1, 1]} : vector<32x32xf32> to vector<4x32xf32>
    %330 = vector.extract_strided_slice %315 {offsets = [24, 0], sizes = [4, 32], strides = [1, 1]} : vector<32x32xf32> to vector<4x32xf32>
    %331 = vector.extract_strided_slice %314 {offsets = [28, 0], sizes = [4, 32], strides = [1, 1]} : vector<32x32xf32> to vector<4x32xf32>
    %332 = vector.extract_strided_slice %315 {offsets = [28, 0], sizes = [4, 32], strides = [1, 1]} : vector<32x32xf32> to vector<4x32xf32>
    %333 = tpu.concatenate %325, %326, %327, %328, %329, %330, %331, %332 in 0 : vector<4x32xf32>, vector<4x32xf32>, vector<4x32xf32>, vector<4x32xf32>, vector<4x32xf32>, vector<4x32xf32>, vector<4x32xf32>, vector<4x32xf32> -> vector<32x32xf32>
    %334 = vector.extract_strided_slice %23 {offsets = [7, 0, 0], sizes = [1, 32, 32], strides = [1, 1, 1]} : vector<8x32x32xf32> to vector<1x32x32xf32>
    %335 = vector.shape_cast %334 : vector<1x32x32xf32> to vector<32x32xf32>
    %336 = arith.mulf %324, %304 : vector<32x32xf32>
    %cst_46 = arith.constant dense<0.000000e+00> : vector<32x32xf32>
    %337 = tpu.matmul %336, %4, %cst_46 {dimension_numbers = #tpu.dot_dimension_numbers<[1], [0], [0], [1], [0, 0, 1, 1], [], []>} : vector<32x32xf32>, vector<32x32xf32>, vector<32x32xf32> -> vector<32x32xf32>
    %338 = arith.addf %335, %337 : vector<32x32xf32>
    %339 = math.tanh %338 : vector<32x32xf32>
    %340 = arith.mulf %333, %304 : vector<32x32xf32>
    %cst_47 = arith.constant 1.000000e+00 : f32
    %341 = vector.broadcast %cst_47 : f32 to vector<32x32xf32>
    %342 = arith.subf %341, %333 : vector<32x32xf32>
    %343 = arith.mulf %342, %339 : vector<32x32xf32>
    %344 = arith.addf %340, %343 : vector<32x32xf32>
    %c0_48 = arith.constant 0 : index
    %c0_49 = arith.constant 0 : index
    %345 = vector.load %arg9[%c0_48, %c0_49] : memref<32x32xf32, #tpu.memory_space<vmem>>, vector<32x32xf32>
    tpu.vector_store %arg9[%c0_48, %c0_49], %344 {strides = array<i32>} : memref<32x32xf32, #tpu.memory_space<vmem>>, vector<32x32xf32>,
    return
  }
  func.func @transform_0(%arg0: i32, %arg1: i32) -> (i32, i32, i32) {
    %c0_i32 = arith.constant 0 : i32
    %c0_i32_0 = arith.constant 0 : i32
    return %arg1, %arg0, %c0_i32 : i32, i32, i32
  }
  func.func @transform_1(%arg0: i32, %arg1: i32) -> (i32, i32) {
    %c0_i32 = arith.constant 0 : i32
    %c0_i32_0 = arith.constant 0 : i32
    %c0_i32_1 = arith.constant 0 : i32
    return %c0_i32, %c0_i32_0 : i32, i32
  }
  func.func @transform_2(%arg0: i32, %arg1: i32) -> (i32, i32) {
    %c0_i32 = arith.constant 0 : i32
    %c0_i32_0 = arith.constant 0 : i32
    %c0_i32_1 = arith.constant 0 : i32
    return %c0_i32, %c0_i32_0 : i32, i32
  }
  func.func @transform_3(%arg0: i32, %arg1: i32) -> (i32, i32) {
    %c0_i32 = arith.constant 0 : i32
    %c0_i32_0 = arith.constant 0 : i32
    %c0_i32_1 = arith.constant 0 : i32
    return %c0_i32, %c0_i32_0 : i32, i32
  }
  func.func @transform_4(%arg0: i32, %arg1: i32) -> (i32, i32) {
    %c0_i32 = arith.constant 0 : i32
    %c0_i32_0 = arith.constant 0 : i32
    %c0_i32_1 = arith.constant 0 : i32
    return %c0_i32, %c0_i32_0 : i32, i32
  }
  func.func @transform_5(%arg0: i32, %arg1: i32) -> (i32, i32) {
    %c0_i32 = arith.constant 0 : i32
    %c0_i32_0 = arith.constant 0 : i32
    %c0_i32_1 = arith.constant 0 : i32
    return %c0_i32, %c0_i32_0 : i32, i32
  }
  func.func @transform_6(%arg0: i32, %arg1: i32) -> (i32, i32) {
    %c0_i32 = arith.constant 0 : i32
    %c0_i32_0 = arith.constant 0 : i32
    %c0_i32_1 = arith.constant 0 : i32
    return %c0_i32, %c0_i32_0 : i32, i32
  }
  func.func @transform_7(%arg0: i32, %arg1: i32) -> (i32, i32) {
    %c0_i32 = arith.constant 0 : i32
    %c0_i32_0 = arith.constant 0 : i32
    return %arg0, %c0_i32 : i32, i32
  }
}

</mosaic_0001>

<bundles_post_ra>
// kernel: tpu_custom_call.1
= control target key start
LH: loop header
LB: loop body
LE: loop exit
PB: predicated region body
PF: predicated region fallthrough
CT: control target
= control target key end

     0   :  { %vm31_vm0 = vcmask 261120   ;;  %v3578_v5 = vmov 0.0   ;;  %v3579_v6 = vmov 0   ;;  %s4420_s0 = inlined_call_operand.vmem [shape: f32[8,32,1], index: 0, kind: input, shape index: {}]   ;;  %s4421_s1 = inlined_call_operand.vmem [shape: f32[1,64], index: 1, kind: input, shape index: {}]   ;;  %s4422_s2 = inlined_call_operand.vmem [shape: f32[32,64], index: 2, kind: input, shape index: {}]   ;;  %s4423_s3 = inlined_call_operand.vmem [shape: f32[1,64], index: 3, kind: input, shape index: {}]   ;;  %s4424_s4 = inlined_call_operand.vmem [shape: f32[1,32], index: 4, kind: input, shape index: {}]   ;;  %s4425_s5 = inlined_call_operand.vmem [shape: f32[32,32], index: 5, kind: input, shape index: {}]   ;;  %s4426_s6 = inlined_call_operand.vmem [shape: f32[1,32], index: 6, kind: input, shape index: {}]   ;;  %s4427_s7 = inlined_call_operand.hbm [shape: f32[32,32], index: 7, kind: output, shape index: {}]  }
   0x1   :  { %v36_v0 = vld [vmem:[%s4422_s2] sm:$0xff]  ;;  %v37_v1 = vld [vmem:[%s4422_s2 + $0x8] sm:$0xff]  ;;  %v38_v2 = vld [vmem:[%s4422_s2 + $0x10] sm:$0xff]  ;;  %32 = vst.msk [vmem:[#allocation2] sm:$0xff] %vm31_vm0, %v3578_v5  ;;  %3356 = vset.pattern.permute.xlu0 %v3579_v6  ;;  %3357 = vset.pattern.permute.xlu1 %v3579_v6 }
   0x2   :  { %v3633_v3 = vpack.c.bf16 %v37_v1, %v36_v0  ;;  %v39_v4 = vld [vmem:[%s4422_s2 + $0x18] sm:$0xff]  ;;  %33 = vst.msk [vmem:[#allocation2 + $0x8] sm:$0xff] %vm31_vm0, %v3578_v5  ;;  %34 = vst.msk [vmem:[#allocation2 + $0x10] sm:$0xff] %vm31_vm0, %v3578_v5  ;;  %v44_v7 = vld [vmem:[%s4420_s0] sm:$0xff] }
   0x3   :  { %35 = vst.msk [vmem:[#allocation2 + $0x18] sm:$0xff] %vm31_vm0, %v3578_v5  ;;  %v3645_v8 = vpack.c.bf16 %v39_v4, %v38_v2  ;;  %79 = vperm.xlu0 %3356, %v44_v7  }
   0x4   :  { %12 = vsyncpa [#allocation3], 0  ;;  %3223 = vmatprep.subr.bf16.mxu0 %v3633_v3  ;;  %v40_v13 = vld [vmem:[%s4425_s5] sm:$0xff]  ;;  %v41_v14 = vld [vmem:[%s4425_s5 + $0x8] sm:$0xff]  ;;  %s3580_s22 = smov 96   ;;  %vm540_vm1 = vcmask 1043456  }
   0x5   :  { %3225 = vmatpush3.bf16.msra.mxu0 %v3633_v3  ;;  %v3678_v15 = vpack.c.bf16 %v41_v14, %v40_v13  ;;  %v3685_v16 = vld [vmem:[%s4421_s1] ss:$0 sm:$0xff]  ;;  %v42_v26 = vld [vmem:[%s4425_s5 + $0x10] sm:$0xff]  ;;  %v43_v27 = vld [vmem:[%s4425_s5 + $0x18] sm:$0xff] }
   0x6   :  { %3227 = vmatprep.subr.bf16.mxu0 %v3645_v8  ;;  %v3694_v19 = vld [vmem:[%s4423_s3] ss:$0 sm:$0xff]  ;;  %v3703_v29 = vpack.c.bf16 %v43_v27, %v42_v26  ;;  %v45_v32 = vld [vmem:[%s4420_s0 + $0x8] sm:$0xff]  ;;  %v46_v33 = vld [vmem:[%s4420_s0 + $0x10] sm:$0xff] }
   0x7   :  { %3231 = vmatprep.subr.bf16.mxu1 %v3678_v15  ;;  %v47_v60 = vld [vmem:[%s4420_s0 + $0x18] sm:$0xff]  ;;  %v48_v61 = vld [vmem:[%s4420_s0 + $0x20] sm:$0xff] }
   0x8   :  { %v3651_v9 = vld [vmem:[#allocation2] sm:$0xff]  ;;  %3233 = vmatpush3.bf16.msra.mxu1 %v3678_v15 }
   0x9   :  { %3229 = vmatpush3.bf16.msra.mxu0 %v3645_v8  ;;  %v3653_v10 = vld [vmem:[#allocation2 + $0x8] sm:$0xff]  ;;  %3006 = vmatprep.mubr.msk.f32.mxu0 %vm31_vm0, %v3651_v9  ;;  %v3657_v11 = vld [vmem:[#allocation2 + $0x10] sm:$0xff] }
   0xa   :  { %3239 = vmatprep.subr.bf16.mxu0 %v3633_v3  ;;  %v3664_v12 = vld [vmem:[#allocation2 + $0x18] sm:$0xff]  ;;  %3235 = vmatprep.subr.bf16.mxu1 %v3703_v29 }
   0xc   :  { %3007 = vmatmul.mubr.msk.f32.vlgmr.msra.gmra.mrb[0].mxu0 %vm31_vm0, %v3653_v10  ;;  %3237 = vmatpush3.bf16.msra.mxu1 %v3703_v29 }
   0xd   :  { %3009 = vmatprep.mubr.msk.f32.mxu0 %vm31_vm0, %v3657_v11  ;;  %3241 = vmatpush3.bf16.msra.mxu0 %v3633_v3 }
   0xe   :  { %3243 = vmatprep.subr.bf16.mxu0 %v3645_v8  ;;  %3247 = vmatprep.subr.bf16.mxu1 %v3678_v15 }
  0x10   :  { %3010 = vmatmul.mubr.msk.f32.gmra.mrb[2].mxu0 %vm31_vm0, %v3664_v12 }
  0x11   :  { %3245 = vmatpush3.bf16.msra.mxu0 %v3645_v8 }
  0x12   :  { %3255 = vmatprep.subr.bf16.mxu0 %v3633_v3 }
  0x82   :  { %v3687_v17 = vpop.permute.xlu0 %79 }
  0x83   :  { %v243_v18 = vmul.f32 %v3685_v16, %v3687_v17 }
  0x85   :  { %v282_v20 = vadd.f32 %v3694_v19, %v243_v18 }
  0xdf   :  { %v3008_v21 = vpop.f32.mrb[0].mxu0 }
  0xe0   :  { %v475_v22 = vpop.f32.mrb[1].mxu0 }
  0xe1   :  { %v494_v23 = vadd.f32 %v475_v22, %v282_v20 }
  0xe3   :  { %v2778_v24 = vmul.f32 -1.442695, %v494_v23  ;;  %v3011_v34 = vpop.f32.mrb[2].mxu0 }
  0xe4   :  { %v485_v35 = vpop.f32.mrb[3].mxu0 }
  0xe5   :  { %3358 = vpow2.f32 %v2778_v24  ;;  %v3762_v24 = vld [vmem:[%s4426_s6] ss:$0 sm:$0xff] }
  0xef   :  { %v3359_v25 = vpop.eup %3358 }
  0xf0   :  { %v510_v28 = vadd.f32 1.0, %v3359_v25 }
  0xf2   :  { %3360 = vrcp.f32 %v510_v28 }
  0xfc   :  { %v3361_v30 = vpop.eup %3360 }
  0xfd   :  { %528 = vrot.lane.b32.xlu1 %v3361_v30, %s3580_s22  ;;  %v523_v31 = vrot.slane %v3361_v30, 4 }
  0xff   :  { %524 = vrot.lane.b32.xlu0 %v523_v31, %s3580_s22 }
 0x101   :  { %84 = vperm.xlu1 %3357, %v45_v32  }
 0x103   :  { %89 = vperm.xlu0 %3356, %v46_v33  }
 0x16f   :  { %v529_v36 = vpop.permute.xlu1 %528 }
 0x170   :  { %v542_v37 = vsel %vm540_vm1, %v523_v31, %v529_v36 }
 0x171   :  { %v525_v38 = vpop.permute.xlu0 %524  ;;  %v568_v41 = vmul.f32 %v542_v37, %v3653_v10 }
 0x172   :  { %v541_v39 = vsel %vm540_vm1, %v3361_v30, %v525_v38 }
 0x173   :  { %v567_v40 = vmul.f32 %v541_v39, %v3651_v9 }
 0x175   :  { %3020 = vmatprep.mubr.msk.f32.mxu1 %vm31_vm0, %v567_v40 }
 0x176   :  { %3021 = vmatmul.mubr.msk.f32.vlgmr.msra.gmra.mrb[0].mxu1 %vm31_vm0, %v568_v41 }
 0x177   :  { %3249 = vmatpush3.bf16.msra.mxu1 %v3678_v15 }
 0x178   :  { %3251 = vmatprep.subr.bf16.mxu1 %v3703_v29 }
 0x17b   :  { %3253 = vmatpush3.bf16.msra.mxu1 %v3703_v29 }
 0x17c   :  { %3263 = vmatprep.subr.bf16.mxu1 %v3678_v15 }
 0x180   :  { %v85_v42 = vpop.permute.xlu1 %84 }
 0x181   :  { %v244_v43 = vmul.f32 %v3685_v16, %v85_v42 }
 0x182   :  { %v3727_v44 = vpop.permute.xlu0 %89 }
 0x183   :  { %v283_v45 = vadd.f32 %v3694_v19, %v244_v43  ;;  %v245_v46 = vmul.f32 %v3685_v16, %v3727_v44 }
 0x185   :  { %v495_v47 = vadd.f32 %v3008_v21, %v283_v45  ;;  %v284_v48 = vadd.f32 %v3694_v19, %v245_v46  ;;  %v3754_v21 = vld [vmem:[%s4424_s4] ss:$0 sm:$0xff] }
 0x186   :  { %v322_v22 = vmul.f32 %v3754_v21, %v85_v42  ;;  %v321_v23 = vmul.f32 %v3754_v21, %v3687_v17 }
 0x187   :  { %v2779_v49 = vmul.f32 -1.442695, %v495_v47  ;;  %v496_v50 = vadd.f32 %v485_v35, %v284_v48 }
 0x188   :  { %v361_v25 = vadd.f32 %v3762_v24, %v322_v22  ;;  %v360_v28 = vadd.f32 %v3762_v24, %v321_v23  ;;  %v50_v23 = vld [vmem:[%s4420_s0 + $0x30] sm:$0xff] }
 0x189   :  { %3362 = vpow2.f32 %v2779_v49  ;;  %v2780_v51 = vmul.f32 -1.442695, %v496_v50 }
 0x18b   :  { %3364 = vpow2.f32 %v2780_v51 }
 0x193   :  { %v3363_v52 = vpop.eup %3362 }
 0x194   :  { %v511_v53 = vadd.f32 1.0, %v3363_v52 }
 0x195   :  { %v3365_v54 = vpop.eup %3364 }
 0x196   :  { %3366 = vrcp.f32 %v511_v53  ;;  %v512_v55 = vadd.f32 1.0, %v3365_v54 }
 0x198   :  { %3368 = vrcp.f32 %v512_v55 }
 0x1a0   :  { %v3367_v56 = vpop.eup %3366 }
 0x1a1   :  { %v532_v57 = vrot.slane %v3367_v56, 4 }
 0x1a2   :  { %v3369_v58 = vpop.eup %3368 }
 0x1a3   :  { %533 = vrot.lane.b32.xlu1 %v532_v57, %s3580_s22  ;;  %v546_v59 = vrot.slane %v3369_v58, 4 }
 0x1a5   :  { %547 = vrot.lane.b32.xlu0 %v546_v59, %s3580_s22 }
 0x1a7   :  { %537 = vrot.lane.b32.xlu1 %v3367_v56, %s3580_s22 }
 0x1a9   :  { %551 = vrot.lane.b32.xlu0 %v3369_v58, %s3580_s22 }
 0x1ab   :  { %94 = vperm.xlu1 %3357, %v47_v60  }
 0x1ad   :  { %99 = vperm.xlu0 %3356, %v48_v61  }
 0x215   :  { %v534_v62 = vpop.permute.xlu1 %533 }
 0x216   :  { %v543_v63 = vsel %vm540_vm1, %v3367_v56, %v534_v62 }
 0x217   :  { %v569_v0 = vmul.f32 %v543_v63, %v3657_v11  ;;  %v548_v26 = vpop.permute.xlu0 %547 }
 0x218   :  { %v563_v36 = vsel %vm540_vm1, %v3369_v58, %v548_v26 }
 0x219   :  { %v538_v1 = vpop.permute.xlu1 %537  ;;  %3023 = vmatprep.mubr.msk.f32.mxu1 %vm31_vm0, %v569_v0  ;;  %v680_v39 = vsub.f32 1.0, %v563_v36  ;;  %v676_v42 = vmul.f32 %v563_v36, %v3651_v9 }
 0x21a   :  { %v544_v2 = vsel %vm540_vm1, %v532_v57, %v538_v1 }
 0x21b   :  { %v570_v4 = vmul.f32 %v544_v2, %v3664_v12  ;;  %v552_v17 = vpop.permute.xlu0 %551 }
 0x21c   :  { %v564_v35 = vsel %vm540_vm1, %v546_v59, %v552_v17 }
 0x21d   :  { %3024 = vmatmul.mubr.msk.f32.gmra.mrb[2].mxu1 %vm31_vm0, %v570_v4  ;;  %v681_v37 = vsub.f32 1.0, %v564_v35  ;;  %v677_v45 = vmul.f32 %v564_v35, %v3653_v10  ;;  %v323_v10 = vmul.f32 %v3754_v21, %v3727_v44 }
 0x21f   :  { %v362_v50 = vadd.f32 %v3762_v24, %v323_v10 }
 0x22a   :  { %v95_v5 = vpop.permute.xlu1 %94 }
 0x22b   :  { %v246_v6 = vmul.f32 %v3685_v16, %v95_v5  ;;  %v324_v9 = vmul.f32 %v3754_v21, %v95_v5 }
 0x22c   :  { %v3789_v53 = vpop.permute.xlu0 %99 }
 0x22d   :  { %v285_v7 = vadd.f32 %v3694_v19, %v246_v6  ;;  %v363_v48 = vadd.f32 %v3762_v24, %v324_v9  ;;  %v247_v5 = vmul.f32 %v3685_v16, %v3789_v53 }
 0x22f   :  { %v497_v13 = vadd.f32 %v3011_v34, %v285_v7  ;;  %v286_v7 = vadd.f32 %v3694_v19, %v247_v5 }
 0x231   :  { %v2781_v14 = vmul.f32 -1.442695, %v497_v13 }
 0x233   :  { %3370 = vpow2.f32 %v2781_v14 }
 0x23d   :  { %v3371_v18 = vpop.eup %3370 }
 0x23e   :  { %v513_v20 = vadd.f32 1.0, %v3371_v18 }
 0x240   :  { %3372 = vrcp.f32 %v513_v20 }
 0x249   :  { %v3022_v27 = vpop.f32.mrb[0].mxu1 }
 0x24a   :  { %v3373_v30 = vpop.eup %3372  ;;  %v669_v31 = vadd.f32 %v3022_v27, %v361_v25  ;;  %v649_v32 = vpop.f32.mrb[1].mxu1  ;;  %v49_v25 = vld [vmem:[%s4420_s0 + $0x28] sm:$0xff] }
 0x24b   :  { %v668_v33 = vadd.f32 %v649_v32, %v360_v28  ;;  %560 = vrot.lane.b32.xlu0 %v3373_v30, %s3580_s22  ;;  %v555_v34 = vrot.slane %v3373_v30, 4 }
 0x24c   :  { %3374 = vtanh.f32 %v669_v31 }
 0x24d   :  { %3376 = vtanh.f32 %v668_v33  ;;  %556 = vrot.lane.b32.xlu1 %v555_v34, %s3580_s22 }
 0x256   :  { %v3375_v38 = vpop.eup %3374 }
 0x257   :  { %v3377_v40 = vpop.eup %3376  ;;  %v685_v41 = vmul.f32 %v3375_v38, %v681_v37 }
 0x258   :  { %v684_v43 = vmul.f32 %v3377_v40, %v680_v39 }
 0x259   :  { %v3774_v47 = vadd.f32 %v685_v41, %v677_v45 }
 0x25a   :  { %v3772_v46 = vadd.f32 %v684_v43, %v676_v42 }
 0x25c   :  { %3034 = vmatprep.mubr.msk.f32.mxu0 %vm31_vm0, %v3772_v46 }
 0x25d   :  { %3035 = vmatmul.mubr.msk.f32.vlgmr.msra.gmra.mrb[4].mxu0 %vm31_vm0, %v3774_v47 }
 0x25e   :  { %3257 = vmatpush3.bf16.msra.mxu0 %v3633_v3 }
 0x25f   :  { %3259 = vmatprep.subr.bf16.mxu0 %v3645_v8 }
 0x262   :  { %3261 = vmatpush3.bf16.msra.mxu0 %v3645_v8 }
 0x263   :  { %3271 = vmatprep.subr.bf16.mxu0 %v3633_v3 }
 0x2bd   :  { %v561_v55 = vpop.permute.xlu0 %560 }
 0x2be   :  { %v566_v57 = vsel %vm540_vm1, %v555_v34, %v561_v55  ;;  %v52_v55 = vld [vmem:[%s4420_s0 + $0x40] sm:$0xff] }
 0x2bf   :  { %v557_v56 = vpop.permute.xlu1 %556  ;;  %v683_v59 = vsub.f32 1.0, %v566_v57  ;;  %v679_v1 = vmul.f32 %v566_v57, %v3664_v12 }
 0x2c0   :  { %v565_v58 = vsel %vm540_vm1, %v3373_v30, %v557_v56 }
 0x2c1   :  { %v682_v60 = vsub.f32 1.0, %v565_v58  ;;  %v678_v63 = vmul.f32 %v565_v58, %v3657_v11 }
 0x2f0   :  { %v3025_v49 = vpop.f32.mrb[2].mxu1 }
 0x2f1   :  { %v671_v51 = vadd.f32 %v3025_v49, %v363_v48  ;;  %v659_v52 = vpop.f32.mrb[3].mxu1 }
 0x2f2   :  { %v670_v54 = vadd.f32 %v659_v52, %v362_v50 }
 0x2f3   :  { %3378 = vtanh.f32 %v671_v51 }
 0x2f4   :  { %3380 = vtanh.f32 %v670_v54  ;;  %v51_v54 = vld [vmem:[%s4420_s0 + $0x38] sm:$0xff] }
 0x2fd   :  { %v3379_v44 = vpop.eup %3378 }
 0x2fe   :  { %v3381_v61 = vpop.eup %3380  ;;  %v687_v62 = vmul.f32 %v3379_v44, %v683_v59 }
 0x2ff   :  { %v686_v0 = vmul.f32 %v3381_v61, %v682_v60 }
 0x300   :  { %v3797_v4 = vadd.f32 %v687_v62, %v679_v1 }
 0x301   :  { %v3795_v2 = vadd.f32 %v686_v0, %v678_v63 }
 0x303   :  { %3037 = vmatprep.mubr.msk.f32.mxu0 %vm31_vm0, %v3795_v2 }
 0x304   :  { %3038 = vmatmul.mubr.msk.f32.gmra.mrb[6].mxu0 %vm31_vm0, %v3797_v4 }
 0x330   :  { %v3036_v6 = vpop.f32.mrb[4].mxu0 }
 0x331   :  { %v770_v11 = vpop.f32.mrb[5].mxu0 }
 0x332   :  { %v789_v13 = vadd.f32 %v770_v11, %v286_v7  ;;  %v325_v11 = vmul.f32 %v3754_v21, %v3789_v53 }
 0x334   :  { %v2790_v14 = vmul.f32 -1.442695, %v789_v13 }
 0x336   :  { %3382 = vpow2.f32 %v2790_v14 }
 0x340   :  { %v3383_v12 = vpop.eup %3382 }
 0x341   :  { %v805_v18 = vadd.f32 1.0, %v3383_v12 }
 0x343   :  { %3384 = vrcp.f32 %v805_v18  ;;  %v364_v18 = vadd.f32 %v3762_v24, %v325_v11  ;;  %v54_v11 = vld [vmem:[%s4420_s0 + $0x50] sm:$0xff] }
 0x34d   :  { %v3385_v20 = vpop.eup %3384 }
 0x34e   :  { %823 = vrot.lane.b32.xlu0 %v3385_v20, %s3580_s22  ;;  %v818_v22 = vrot.slane %v3385_v20, 4 }
 0x350   :  { %819 = vrot.lane.b32.xlu1 %v818_v22, %s3580_s22 }
 0x352   :  { %109 = vperm.xlu0 %3356, %v50_v23  }
 0x354   :  { %104 = vperm.xlu1 %3357, %v49_v25  }
 0x3c0   :  { %v824_v26 = vpop.permute.xlu0 %823 }
 0x3c1   :  { %v836_v27 = vsel %vm540_vm1, %v818_v22, %v824_v26 }
 0x3c2   :  { %v820_v28 = vpop.permute.xlu1 %819  ;;  %v862_v32 = vmul.f32 %v836_v27, %v3774_v47 }
 0x3c3   :  { %v835_v30 = vsel %vm540_vm1, %v3385_v20, %v820_v28 }
 0x3c4   :  { %v861_v31 = vmul.f32 %v835_v30, %v3772_v46 }
 0x3c6   :  { %3048 = vmatprep.mubr.msk.f32.mxu1 %vm31_vm0, %v861_v31 }
 0x3c7   :  { %3049 = vmatmul.mubr.msk.f32.vlgmr.msra.gmra.mrb[4].mxu1 %vm31_vm0, %v862_v32 }
 0x3c8   :  { %3265 = vmatpush3.bf16.msra.mxu1 %v3678_v15 }
 0x3c9   :  { %3267 = vmatprep.subr.bf16.mxu1 %v3703_v29 }
 0x3cc   :  { %3269 = vmatpush3.bf16.msra.mxu1 %v3703_v29 }
 0x3cd   :  { %3279 = vmatprep.subr.bf16.mxu1 %v3678_v15 }
 0x3d1   :  { %v3824_v33 = vpop.permute.xlu0 %109 }
 0x3d2   :  { %v249_v34 = vmul.f32 %v3685_v16, %v3824_v33 }
 0x3d3   :  { %v105_v17 = vpop.permute.xlu1 %104 }
 0x3d4   :  { %v248_v35 = vmul.f32 %v3685_v16, %v105_v17  ;;  %v288_v38 = vadd.f32 %v3694_v19, %v249_v34  ;;  %v326_v7 = vmul.f32 %v3754_v21, %v105_v17 }
 0x3d6   :  { %v287_v36 = vadd.f32 %v3694_v19, %v248_v35  ;;  %v365_v13 = vadd.f32 %v3762_v24, %v326_v7 }
 0x3d7   :  { %v3039_v37 = vpop.f32.mrb[6].mxu0 }
 0x3d8   :  { %v790_v39 = vadd.f32 %v3036_v6, %v287_v36  ;;  %v780_v40 = vpop.f32.mrb[7].mxu0 }
 0x3d9   :  { %v791_v41 = vadd.f32 %v780_v40, %v288_v38 }
 0x3da   :  { %v2791_v42 = vmul.f32 -1.442695, %v790_v39 }
 0x3db   :  { %v2792_v43 = vmul.f32 -1.442695, %v791_v41 }
 0x3dc   :  { %3386 = vpow2.f32 %v2791_v42 }
 0x3dd   :  { %3388 = vpow2.f32 %v2792_v43 }
 0x3e6   :  { %v3387_v45 = vpop.eup %3386 }
 0x3e7   :  { %v3389_v9 = vpop.eup %3388  ;;  %v806_v10 = vadd.f32 1.0, %v3387_v45 }
 0x3e8   :  { %v807_v48 = vadd.f32 1.0, %v3389_v9 }
 0x3e9   :  { %3390 = vrcp.f32 %v806_v10 }
 0x3ea   :  { %3392 = vrcp.f32 %v807_v48 }
 0x3f3   :  { %v3391_v49 = vpop.eup %3390 }
 0x3f4   :  { %v3393_v50 = vpop.eup %3392  ;;  %v827_v51 = vrot.slane %v3391_v49, 4 }
 0x3f5   :  { %v840_v52 = vrot.slane %v3393_v50, 4 }
 0x3f6   :  { %828 = vrot.lane.b32.xlu1 %v827_v51, %s3580_s22 }
 0x3f7   :  { %841 = vrot.lane.b32.xlu0 %v840_v52, %s3580_s22 }
 0x3fa   :  { %832 = vrot.lane.b32.xlu1 %v3391_v49, %s3580_s22 }
 0x3fb   :  { %845 = vrot.lane.b32.xlu0 %v3393_v50, %s3580_s22 }
 0x3fe   :  { %114 = vperm.xlu1 %3357, %v51_v54  }
 0x3ff   :  { %119 = vperm.xlu0 %3356, %v52_v55  }
 0x468   :  { %v829_v56 = vpop.permute.xlu1 %828 }
 0x469   :  { %v837_v57 = vsel %vm540_vm1, %v3391_v49, %v829_v56  ;;  %v842_v14 = vpop.permute.xlu0 %841 }
 0x46a   :  { %v863_v58 = vmul.f32 %v837_v57, %v3795_v2  ;;  %v857_v28 = vsel %vm540_vm1, %v3393_v50, %v842_v14 }
 0x46b   :  { %v974_v32 = vsub.f32 1.0, %v857_v28  ;;  %v970_v35 = vmul.f32 %v857_v28, %v3772_v46 }
 0x46c   :  { %v833_v59 = vpop.permute.xlu1 %832  ;;  %3051 = vmatprep.mubr.msk.f32.mxu1 %vm31_vm0, %v863_v58 }
 0x46d   :  { %v838_v44 = vsel %vm540_vm1, %v827_v51, %v833_v59  ;;  %v846_v27 = vpop.permute.xlu0 %845 }
 0x46e   :  { %v864_v60 = vmul.f32 %v838_v44, %v3797_v4  ;;  %v858_v53 = vsel %vm540_vm1, %v840_v52, %v846_v27 }
 0x46f   :  { %v975_v30 = vsub.f32 1.0, %v858_v53 }
 0x470   :  { %3052 = vmatmul.mubr.msk.f32.gmra.mrb[6].mxu1 %vm31_vm0, %v864_v60 }
 0x47d   :  { %v115_v61 = vpop.permute.xlu1 %114 }
 0x47e   :  { %v250_v62 = vmul.f32 %v3685_v16, %v115_v61  ;;  %v328_v46 = vmul.f32 %v3754_v21, %v115_v61  ;;  %v3877_v9 = vpop.permute.xlu0 %119 }
 0x47f   :  { %v251_v61 = vmul.f32 %v3685_v16, %v3877_v9 }
 0x480   :  { %v289_v63 = vadd.f32 %v3694_v19, %v250_v62  ;;  %v367_v40 = vadd.f32 %v3762_v24, %v328_v46 }
 0x482   :  { %v792_v0 = vadd.f32 %v3039_v37, %v289_v63  ;;  %v971_v37 = vmul.f32 %v858_v53, %v3774_v47  ;;  %v327_v47 = vmul.f32 %v3754_v21, %v3824_v33  ;;  %v290_v63 = vadd.f32 %v3694_v19, %v251_v61 }
 0x484   :  { %v2793_v1 = vmul.f32 -1.442695, %v792_v0  ;;  %v366_v42 = vadd.f32 %v3762_v24, %v327_v47 }
 0x486   :  { %3394 = vpow2.f32 %v2793_v1 }
 0x490   :  { %v3395_v5 = vpop.eup %3394 }
 0x491   :  { %v808_v6 = vadd.f32 1.0, %v3395_v5 }
 0x493   :  { %3396 = vrcp.f32 %v808_v6 }
 0x49a   :  { %v3050_v12 = vpop.f32.mrb[4].mxu1 }
 0x49b   :  { %v963_v20 = vadd.f32 %v3050_v12, %v365_v13  ;;  %v943_v22 = vpop.f32.mrb[5].mxu1  ;;  %v53_v13 = vld [vmem:[%s4420_s0 + $0x48] sm:$0xff] }
 0x49c   :  { %v962_v23 = vadd.f32 %v943_v22, %v364_v18 }
 0x49d   :  { %v3397_v25 = vpop.eup %3396  ;;  %3398 = vtanh.f32 %v963_v20 }
 0x49e   :  { %3400 = vtanh.f32 %v962_v23  ;;  %854 = vrot.lane.b32.xlu0 %v3397_v25, %s3580_s22  ;;  %v849_v26 = vrot.slane %v3397_v25, 4 }
 0x4a0   :  { %850 = vrot.lane.b32.xlu1 %v849_v26, %s3580_s22 }
 0x4a7   :  { %v3399_v31 = vpop.eup %3398 }
 0x4a8   :  { %v3401_v34 = vpop.eup %3400  ;;  %v979_v17 = vmul.f32 %v3399_v31, %v975_v30 }
 0x4a9   :  { %v978_v36 = vmul.f32 %v3401_v34, %v974_v32 }
 0x4aa   :  { %v3862_v39 = vadd.f32 %v979_v17, %v971_v37 }
 0x4ab   :  { %v3860_v38 = vadd.f32 %v978_v36, %v970_v35 }
 0x4ad   :  { %3062 = vmatprep.mubr.msk.f32.mxu0 %vm31_vm0, %v3860_v38 }
 0x4ae   :  { %3063 = vmatmul.mubr.msk.f32.vlgmr.msra.gmra.mrb[8].mxu0 %vm31_vm0, %v3862_v39 }
 0x4af   :  { %3273 = vmatpush3.bf16.msra.mxu0 %v3633_v3 }
 0x4b0   :  { %3275 = vmatprep.subr.bf16.mxu0 %v3645_v8 }
 0x4b3   :  { %3277 = vmatpush3.bf16.msra.mxu0 %v3645_v8 }
 0x4b4   :  { %3287 = vmatprep.subr.bf16.mxu0 %v3633_v3 }
 0x510   :  { %v855_v48 = vpop.permute.xlu0 %854 }
 0x511   :  { %v860_v50 = vsel %vm540_vm1, %v849_v26, %v855_v48  ;;  %v56_v48 = vld [vmem:[%s4420_s0 + $0x60] sm:$0xff] }
 0x512   :  { %v851_v49 = vpop.permute.xlu1 %850  ;;  %v977_v52 = vsub.f32 1.0, %v860_v50  ;;  %v973_v59 = vmul.f32 %v860_v50, %v3797_v4 }
 0x513   :  { %v859_v51 = vsel %vm540_vm1, %v3397_v25, %v851_v49 }
 0x514   :  { %v976_v54 = vsub.f32 1.0, %v859_v51  ;;  %v972_v57 = vmul.f32 %v859_v51, %v3795_v2 }
 0x543   :  { %v3053_v41 = vpop.f32.mrb[6].mxu1 }
 0x544   :  { %v965_v43 = vadd.f32 %v3053_v41, %v367_v40  ;;  %v953_v45 = vpop.f32.mrb[7].mxu1 }
 0x545   :  { %v964_v10 = vadd.f32 %v953_v45, %v366_v42 }
 0x546   :  { %3402 = vtanh.f32 %v965_v43 }
 0x547   :  { %3404 = vtanh.f32 %v964_v10  ;;  %v55_v10 = vld [vmem:[%s4420_s0 + $0x58] sm:$0xff] }
 0x550   :  { %v3403_v33 = vpop.eup %3402 }
 0x551   :  { %v3405_v55 = vpop.eup %3404  ;;  %v981_v56 = vmul.f32 %v3403_v33, %v977_v52 }
 0x552   :  { %v980_v58 = vmul.f32 %v3405_v55, %v976_v54 }
 0x553   :  { %v3885_v60 = vadd.f32 %v981_v56, %v973_v59 }
 0x554   :  { %v3883_v44 = vadd.f32 %v980_v58, %v972_v57 }
 0x556   :  { %3065 = vmatprep.mubr.msk.f32.mxu0 %vm31_vm0, %v3883_v44 }
 0x557   :  { %3066 = vmatmul.mubr.msk.f32.gmra.mrb[10].mxu0 %vm31_vm0, %v3885_v60 }
 0x581   :  { %v3064_v62 = vpop.f32.mrb[8].mxu0 }
 0x582   :  { %v1064_v2 = vpop.f32.mrb[9].mxu0 }
 0x583   :  { %v1083_v0 = vadd.f32 %v1064_v2, %v290_v63  ;;  %v329_v2 = vmul.f32 %v3754_v21, %v3877_v9 }
 0x585   :  { %v2802_v1 = vmul.f32 -1.442695, %v1083_v0 }
 0x587   :  { %3406 = vpow2.f32 %v2802_v1 }
 0x591   :  { %v3407_v4 = vpop.eup %3406 }
 0x592   :  { %v1099_v5 = vadd.f32 1.0, %v3407_v4 }
 0x594   :  { %3408 = vrcp.f32 %v1099_v5  ;;  %v368_v5 = vadd.f32 %v3762_v24, %v329_v2  ;;  %v58_v2 = vld [vmem:[%s4420_s0 + $0x70] sm:$0xff] }
 0x59e   :  { %v3409_v6 = vpop.eup %3408 }
 0x59f   :  { %1117 = vrot.lane.b32.xlu0 %v3409_v6, %s3580_s22  ;;  %v1112_v7 = vrot.slane %v3409_v6, 4 }
 0x5a1   :  { %1113 = vrot.lane.b32.xlu1 %v1112_v7, %s3580_s22 }
 0x5a3   :  { %129 = vperm.xlu0 %3356, %v54_v11  }
 0x5a5   :  { %124 = vperm.xlu1 %3357, %v53_v13  }
 0x611   :  { %v1118_v14 = vpop.permute.xlu0 %1117 }
 0x612   :  { %v1130_v12 = vsel %vm540_vm1, %v1112_v7, %v1118_v14 }
 0x613   :  { %v1114_v18 = vpop.permute.xlu1 %1113  ;;  %v1156_v23 = vmul.f32 %v1130_v12, %v3862_v39 }
 0x614   :  { %v1129_v20 = vsel %vm540_vm1, %v3409_v6, %v1114_v18 }
 0x615   :  { %v1155_v22 = vmul.f32 %v1129_v20, %v3860_v38 }
 0x617   :  { %3076 = vmatprep.mubr.msk.f32.mxu1 %vm31_vm0, %v1155_v22 }
 0x618   :  { %3077 = vmatmul.mubr.msk.f32.vlgmr.msra.gmra.mrb[8].mxu1 %vm31_vm0, %v1156_v23 }
 0x619   :  { %3281 = vmatpush3.bf16.msra.mxu1 %v3678_v15 }
 0x61a   :  { %3283 = vmatprep.subr.bf16.mxu1 %v3703_v29 }
 0x61d   :  { %3285 = vmatpush3.bf16.msra.mxu1 %v3703_v29 }
 0x61e   :  { %3295 = vmatprep.subr.bf16.mxu1 %v3678_v15 }
 0x622   :  { %v3912_v25 = vpop.permute.xlu0 %129 }
 0x623   :  { %v253_v53 = vmul.f32 %v3685_v16, %v3912_v25 }
 0x624   :  { %v125_v26 = vpop.permute.xlu1 %124 }
 0x625   :  { %v252_v27 = vmul.f32 %v3685_v16, %v125_v26  ;;  %v292_v32 = vadd.f32 %v3694_v19, %v253_v53  ;;  %v330_v63 = vmul.f32 %v3754_v21, %v125_v26 }
 0x627   :  { %v291_v28 = vadd.f32 %v3694_v19, %v252_v27  ;;  %v369_v0 = vadd.f32 %v3762_v24, %v330_v63 }
 0x629   :  { %v1084_v30 = vadd.f32 %v3064_v62, %v291_v28 }
 0x62a   :  { %v3067_v31 = vpop.f32.mrb[10].mxu0 }
 0x62b   :  { %v2803_v34 = vmul.f32 -1.442695, %v1084_v30  ;;  %v1074_v17 = vpop.f32.mrb[11].mxu0 }
 0x62c   :  { %v1085_v35 = vadd.f32 %v1074_v17, %v292_v32 }
 0x62d   :  { %3410 = vpow2.f32 %v2803_v34 }
 0x62e   :  { %v2804_v36 = vmul.f32 -1.442695, %v1085_v35 }
 0x630   :  { %3412 = vpow2.f32 %v2804_v36 }
 0x637   :  { %v3411_v37 = vpop.eup %3410 }
 0x638   :  { %v1100_v46 = vadd.f32 1.0, %v3411_v37 }
 0x63a   :  { %v3413_v47 = vpop.eup %3412  ;;  %3414 = vrcp.f32 %v1100_v46 }
 0x63b   :  { %v1101_v40 = vadd.f32 1.0, %v3413_v47 }
 0x63d   :  { %3416 = vrcp.f32 %v1101_v40 }
 0x644   :  { %v3415_v41 = vpop.eup %3414 }
 0x645   :  { %v1121_v42 = vrot.slane %v3415_v41, 4 }
 0x647   :  { %v3417_v43 = vpop.eup %3416  ;;  %1122 = vrot.lane.b32.xlu1 %v1121_v42, %s3580_s22 }
 0x648   :  { %v1134_v45 = vrot.slane %v3417_v43, 4 }
 0x64a   :  { %1135 = vrot.lane.b32.xlu0 %v1134_v45, %s3580_s22 }
 0x64b   :  { %1126 = vrot.lane.b32.xlu1 %v3415_v41, %s3580_s22 }
 0x64e   :  { %1139 = vrot.lane.b32.xlu0 %v3417_v43, %s3580_s22 }
 0x64f   :  { %134 = vperm.xlu1 %3357, %v55_v10  }
 0x652   :  { %139 = vperm.xlu0 %3356, %v56_v48  }
 0x6b9   :  { %v1123_v49 = vpop.permute.xlu1 %1122 }
 0x6ba   :  { %v1131_v50 = vsel %vm540_vm1, %v3415_v41, %v1123_v49 }
 0x6bb   :  { %v1157_v51 = vmul.f32 %v1131_v50, %v3883_v44 }
 0x6bc   :  { %v1136_v1 = vpop.permute.xlu0 %1135 }
 0x6bd   :  { %v1127_v52 = vpop.permute.xlu1 %1126  ;;  %3079 = vmatprep.mubr.msk.f32.mxu1 %vm31_vm0, %v1157_v51  ;;  %v1151_v18 = vsel %vm540_vm1, %v3417_v43, %v1136_v1 }
 0x6be   :  { %v1132_v33 = vsel %vm540_vm1, %v1121_v42, %v1127_v52  ;;  %v1268_v23 = vsub.f32 1.0, %v1151_v18  ;;  %v1264_v53 = vmul.f32 %v1151_v18, %v3860_v38 }
 0x6bf   :  { %v1158_v54 = vmul.f32 %v1132_v33, %v3885_v60 }
 0x6c0   :  { %v1140_v12 = vpop.permute.xlu0 %1139 }
 0x6c1   :  { %3080 = vmatmul.mubr.msk.f32.gmra.mrb[10].mxu1 %vm31_vm0, %v1158_v54  ;;  %v1152_v9 = vsel %vm540_vm1, %v1134_v45, %v1140_v12 }
 0x6c2   :  { %v1269_v20 = vsub.f32 1.0, %v1152_v9  ;;  %v1265_v30 = vmul.f32 %v1152_v9, %v3862_v39  ;;  %v331_v39 = vmul.f32 %v3754_v21, %v3912_v25 }
 0x6c4   :  { %v370_v35 = vadd.f32 %v3762_v24, %v331_v39 }
 0x6ce   :  { %v135_v55 = vpop.permute.xlu1 %134 }
 0x6cf   :  { %v254_v56 = vmul.f32 %v3685_v16, %v135_v55  ;;  %v332_v38 = vmul.f32 %v3754_v21, %v135_v55 }
 0x6d1   :  { %v293_v57 = vadd.f32 %v3694_v19, %v254_v56  ;;  %v371_v34 = vadd.f32 %v3762_v24, %v332_v38  ;;  %v3965_v46 = vpop.permute.xlu0 %139 }
 0x6d2   :  { %v255_v55 = vmul.f32 %v3685_v16, %v3965_v46 }
 0x6d3   :  { %v1086_v58 = vadd.f32 %v3067_v31, %v293_v57 }
 0x6d4   :  { %v294_v57 = vadd.f32 %v3694_v19, %v255_v55 }
 0x6d5   :  { %v2805_v59 = vmul.f32 -1.442695, %v1086_v58 }
 0x6d7   :  { %3418 = vpow2.f32 %v2805_v59 }
 0x6e1   :  { %v3419_v61 = vpop.eup %3418 }
 0x6e2   :  { %v1102_v62 = vadd.f32 1.0, %v3419_v61 }
 0x6e4   :  { %3420 = vrcp.f32 %v1102_v62 }
 0x6eb   :  { %v3078_v4 = vpop.f32.mrb[8].mxu1 }
 0x6ec   :  { %v1257_v6 = vadd.f32 %v3078_v4, %v369_v0  ;;  %v1237_v7 = vpop.f32.mrb[9].mxu1  ;;  %v57_v0 = vld [vmem:[%s4420_s0 + $0x68] sm:$0xff] }
 0x6ed   :  { %v1256_v11 = vadd.f32 %v1237_v7, %v368_v5 }
 0x6ee   :  { %v3421_v13 = vpop.eup %3420  ;;  %3422 = vtanh.f32 %v1257_v6 }
 0x6ef   :  { %3424 = vtanh.f32 %v1256_v11  ;;  %1148 = vrot.lane.b32.xlu0 %v3421_v13, %s3580_s22  ;;  %v1143_v14 = vrot.slane %v3421_v13, 4 }
 0x6f1   :  { %1144 = vrot.lane.b32.xlu1 %v1143_v14, %s3580_s22 }
 0x6f8   :  { %v3423_v22 = vpop.eup %3422 }
 0x6f9   :  { %v3425_v26 = vpop.eup %3424  ;;  %v1273_v27 = vmul.f32 %v3423_v22, %v1269_v20 }
 0x6fa   :  { %v1272_v28 = vmul.f32 %v3425_v26, %v1268_v23 }
 0x6fb   :  { %v3950_v32 = vadd.f32 %v1273_v27, %v1265_v30 }
 0x6fc   :  { %v3948_v31 = vadd.f32 %v1272_v28, %v1264_v53 }
 0x6fe   :  { %3090 = vmatprep.mubr.msk.f32.mxu0 %vm31_vm0, %v3948_v31 }
 0x6ff   :  { %3091 = vmatmul.mubr.msk.f32.vlgmr.msra.gmra.mrb[12].mxu0 %vm31_vm0, %v3950_v32 }
 0x700   :  { %3289 = vmatpush3.bf16.msra.mxu0 %v3633_v3 }
 0x701   :  { %3291 = vmatprep.subr.bf16.mxu0 %v3645_v8 }
 0x704   :  { %3293 = vmatpush3.bf16.msra.mxu0 %v3645_v8 }
 0x705   :  { %3303 = vmatprep.subr.bf16.mxu0 %v3633_v3 }
 0x761   :  { %v1149_v40 = vpop.permute.xlu0 %1148 }
 0x762   :  { %v1154_v42 = vsel %vm540_vm1, %v1143_v14, %v1149_v40  ;;  %v60_v40 = vld [vmem:[%s4420_s0 + $0x80] sm:$0xff] }
 0x763   :  { %v1145_v41 = vpop.permute.xlu1 %1144  ;;  %v1271_v45 = vsub.f32 1.0, %v1154_v42  ;;  %v1267_v52 = vmul.f32 %v1154_v42, %v3885_v60 }
 0x764   :  { %v1153_v43 = vsel %vm540_vm1, %v3421_v13, %v1145_v41 }
 0x765   :  { %v1270_v10 = vsub.f32 1.0, %v1153_v43  ;;  %v1266_v50 = vmul.f32 %v1153_v43, %v3883_v44 }
 0x794   :  { %v3081_v17 = vpop.f32.mrb[10].mxu1 }
 0x795   :  { %v1259_v36 = vadd.f32 %v3081_v17, %v371_v34  ;;  %v1247_v37 = vpop.f32.mrb[11].mxu1 }
 0x796   :  { %v1258_v47 = vadd.f32 %v1247_v37, %v370_v35 }
 0x797   :  { %3426 = vtanh.f32 %v1259_v36 }
 0x798   :  { %3428 = vtanh.f32 %v1258_v47  ;;  %v59_v47 = vld [vmem:[%s4420_s0 + $0x78] sm:$0xff] }
 0x7a1   :  { %v3427_v25 = vpop.eup %3426 }
 0x7a2   :  { %v3429_v48 = vpop.eup %3428  ;;  %v1275_v49 = vmul.f32 %v3427_v25, %v1271_v45 }
 0x7a3   :  { %v1274_v51 = vmul.f32 %v3429_v48, %v1270_v10 }
 0x7a4   :  { %v3973_v54 = vadd.f32 %v1275_v49, %v1267_v52 }
 0x7a5   :  { %v3971_v33 = vadd.f32 %v1274_v51, %v1266_v50 }
 0x7a7   :  { %3093 = vmatprep.mubr.msk.f32.mxu0 %vm31_vm0, %v3971_v33 }
 0x7a8   :  { %3094 = vmatmul.mubr.msk.f32.gmra.mrb[14].mxu0 %vm31_vm0, %v3973_v54 }
 0x7d2   :  { %v3092_v56 = vpop.f32.mrb[12].mxu0 }
 0x7d3   :  { %v1358_v44 = vpop.f32.mrb[13].mxu0 }
 0x7d4   :  { %v1377_v58 = vadd.f32 %v1358_v44, %v294_v57  ;;  %v333_v44 = vmul.f32 %v3754_v21, %v3965_v46 }
 0x7d6   :  { %v2814_v59 = vmul.f32 -1.442695, %v1377_v58 }
 0x7d8   :  { %3430 = vpow2.f32 %v2814_v59 }
 0x7e2   :  { %v3431_v60 = vpop.eup %3430 }
 0x7e3   :  { %v1393_v61 = vadd.f32 1.0, %v3431_v60 }
 0x7e5   :  { %3432 = vrcp.f32 %v1393_v61  ;;  %v372_v61 = vadd.f32 %v3762_v24, %v333_v44 }
 0x7ef   :  { %v3433_v62 = vpop.eup %3432 }
 0x7f0   :  { %1411 = vrot.lane.b32.xlu0 %v3433_v62, %s3580_s22  ;;  %v1406_v63 = vrot.slane %v3433_v62, 4 }
 0x7f2   :  { %1407 = vrot.lane.b32.xlu1 %v1406_v63, %s3580_s22 }
 0x7f4   :  { %149 = vperm.xlu0 %3356, %v58_v2  }
 0x7f6   :  { %144 = vperm.xlu1 %3357, %v57_v0  }
 0x862   :  { %v1412_v1 = vpop.permute.xlu0 %1411 }
 0x863   :  { %v1424_v4 = vsel %vm540_vm1, %v1406_v63, %v1412_v1 }
 0x864   :  { %v1408_v5 = vpop.permute.xlu1 %1407  ;;  %v1450_v11 = vmul.f32 %v1424_v4, %v3950_v32 }
 0x865   :  { %v1423_v6 = vsel %vm540_vm1, %v3433_v62, %v1408_v5 }
 0x866   :  { %v1449_v7 = vmul.f32 %v1423_v6, %v3948_v31 }
 0x868   :  { %3104 = vmatprep.mubr.msk.f32.mxu1 %vm31_vm0, %v1449_v7 }
 0x869   :  { %3105 = vmatmul.mubr.msk.f32.vlgmr.msra.gmra.mrb[12].mxu1 %vm31_vm0, %v1450_v11 }
 0x86a   :  { %3297 = vmatpush3.bf16.msra.mxu1 %v3678_v15 }
 0x86b   :  { %3299 = vmatprep.subr.bf16.mxu1 %v3703_v29 }
 0x86e   :  { %3301 = vmatpush3.bf16.msra.mxu1 %v3703_v29 }
 0x86f   :  { %3311 = vmatprep.subr.bf16.mxu1 %v3678_v15 }
 0x873   :  { %v4000_v13 = vpop.permute.xlu0 %149 }
 0x874   :  { %v257_v9 = vmul.f32 %v3685_v16, %v4000_v13 }
 0x875   :  { %v145_v14 = vpop.permute.xlu1 %144 }
 0x876   :  { %v256_v12 = vmul.f32 %v3685_v16, %v145_v14  ;;  %v296_v23 = vadd.f32 %v3694_v19, %v257_v9  ;;  %v334_v57 = vmul.f32 %v3754_v21, %v145_v14 }
 0x878   :  { %v295_v18 = vadd.f32 %v3694_v19, %v256_v12  ;;  %v373_v58 = vadd.f32 %v3762_v24, %v334_v57  ;;  %v61_v57 = vld [vmem:[%s4420_s0 + $0x88] sm:$0xff] }
 0x87a   :  { %v1378_v20 = vadd.f32 %v3092_v56, %v295_v18 }
 0x87b   :  { %v3095_v22 = vpop.f32.mrb[14].mxu0 }
 0x87c   :  { %v2815_v26 = vmul.f32 -1.442695, %v1378_v20  ;;  %v1368_v27 = vpop.f32.mrb[15].mxu0 }
 0x87d   :  { %v1379_v53 = vadd.f32 %v1368_v27, %v296_v23 }
 0x87e   :  { %3434 = vpow2.f32 %v2815_v26 }
 0x87f   :  { %v2816_v28 = vmul.f32 -1.442695, %v1379_v53 }
 0x881   :  { %3436 = vpow2.f32 %v2816_v28 }
 0x888   :  { %v3435_v30 = vpop.eup %3434 }
 0x889   :  { %v1394_v38 = vadd.f32 1.0, %v3435_v30 }
 0x88b   :  { %v3437_v39 = vpop.eup %3436  ;;  %3438 = vrcp.f32 %v1394_v38 }
 0x88c   :  { %v1395_v34 = vadd.f32 1.0, %v3437_v39 }
 0x88e   :  { %3440 = vrcp.f32 %v1395_v34 }
 0x895   :  { %v3439_v17 = vpop.eup %3438 }
 0x896   :  { %v1415_v35 = vrot.slane %v3439_v17, 4 }
 0x898   :  { %v3441_v36 = vpop.eup %3440  ;;  %1416 = vrot.lane.b32.xlu1 %v1415_v35, %s3580_s22 }
 0x899   :  { %v1428_v37 = vrot.slane %v3441_v36, 4 }
 0x89b   :  { %1429 = vrot.lane.b32.xlu0 %v1428_v37, %s3580_s22 }
 0x89c   :  { %1420 = vrot.lane.b32.xlu1 %v3439_v17, %s3580_s22 }
 0x89f   :  { %1433 = vrot.lane.b32.xlu0 %v3441_v36, %s3580_s22 }
 0x8a0   :  { %154 = vperm.xlu1 %3357, %v59_v47  }
 0x8a3   :  { %159 = vperm.xlu0 %3356, %v60_v40  }
 0x90a   :  { %v1417_v41 = vpop.permute.xlu1 %1416 }
 0x90b   :  { %v1425_v42 = vsel %vm540_vm1, %v3439_v17, %v1417_v41 }
 0x90c   :  { %v1451_v43 = vmul.f32 %v1425_v42, %v3971_v33 }
 0x90d   :  { %v1430_v59 = vpop.permute.xlu0 %1429 }
 0x90e   :  { %v1421_v45 = vpop.permute.xlu1 %1420  ;;  %3107 = vmatprep.mubr.msk.f32.mxu1 %vm31_vm0, %v1451_v43  ;;  %v1445_v1 = vsel %vm540_vm1, %v3441_v36, %v1430_v59  ;;  %v4070_v43 = vld [vmem:[%s4421_s1] ss:$0 sm:$0xff] }
 0x90f   :  { %v1426_v25 = vsel %vm540_vm1, %v1415_v35, %v1421_v45  ;;  %v1562_v6 = vsub.f32 1.0, %v1445_v1  ;;  %v1558_v14 = vmul.f32 %v1445_v1, %v3948_v31 }
 0x910   :  { %v1452_v10 = vmul.f32 %v1426_v25, %v3973_v54 }
 0x911   :  { %v1434_v0 = vpop.permute.xlu0 %1433 }
 0x912   :  { %3108 = vmatmul.mubr.msk.f32.gmra.mrb[14].mxu1 %vm31_vm0, %v1452_v10  ;;  %v1446_v46 = vsel %vm540_vm1, %v1428_v37, %v1434_v0 }
 0x913   :  { %v1563_v4 = vsub.f32 1.0, %v1446_v46  ;;  %v1559_v9 = vmul.f32 %v1446_v46, %v3950_v32  ;;  %v335_v32 = vmul.f32 %v3754_v21, %v4000_v13 }
 0x915   :  { %v374_v26 = vadd.f32 %v3762_v24, %v335_v32 }
 0x91f   :  { %v155_v48 = vpop.permute.xlu1 %154 }
 0x920   :  { %v258_v49 = vmul.f32 %v3685_v16, %v155_v48  ;;  %v336_v31 = vmul.f32 %v3754_v21, %v155_v48 }
 0x922   :  { %v297_v50 = vadd.f32 %v3694_v19, %v258_v49  ;;  %v4053_v28 = vpop.permute.xlu0 %159 }
 0x924   :  { %v1380_v51 = vadd.f32 %v3095_v22, %v297_v50  ;;  %v375_v22 = vadd.f32 %v3762_v24, %v336_v31 }
 0x926   :  { %v2817_v52 = vmul.f32 -1.442695, %v1380_v51 }
 0x928   :  { %3442 = vpow2.f32 %v2817_v52 }
 0x932   :  { %v3443_v55 = vpop.eup %3442 }
 0x933   :  { %v1396_v56 = vadd.f32 1.0, %v3443_v55 }
 0x935   :  { %3444 = vrcp.f32 %v1396_v56  ;;  %v62_v56 = vld [vmem:[%s4420_s0 + $0x90] sm:$0xff] }
 0x93c   :  { %v3106_v60 = vpop.f32.mrb[12].mxu1 }
 0x93d   :  { %v1551_v16 = vadd.f32 %v3106_v60, %v373_v58  ;;  %v1531_v62 = vpop.f32.mrb[13].mxu1 }
 0x93e   :  { %v1550_v19 = vadd.f32 %v1531_v62, %v372_v61 }
 0x93f   :  { %v3445_v63 = vpop.eup %3444  ;;  %3446 = vtanh.f32 %v1551_v16 }
 0x940   :  { %3448 = vtanh.f32 %v1550_v19  ;;  %1442 = vrot.lane.b32.xlu0 %v3445_v63, %s3580_s22  ;;  %v1437_v2 = vrot.slane %v3445_v63, 4 }
 0x942   :  { %1438 = vrot.lane.b32.xlu1 %v1437_v2, %s3580_s22 }
 0x949   :  { %v3447_v5 = vpop.eup %3446 }
 0x94a   :  { %v3449_v7 = vpop.eup %3448  ;;  %v1567_v11 = vmul.f32 %v3447_v5, %v1563_v4 }
 0x94b   :  { %v1566_v12 = vmul.f32 %v3449_v7, %v1562_v6 }
 0x94c   :  { %v4038_v20 = vadd.f32 %v1567_v11, %v1559_v9 }
 0x94d   :  { %v4036_v18 = vadd.f32 %v1566_v12, %v1558_v14 }
 0x94f   :  { %3118 = vmatprep.mubr.msk.f32.mxu0 %vm31_vm0, %v4036_v18 }
 0x950   :  { %3119 = vmatmul.mubr.msk.f32.vlgmr.msra.gmra.mrb[16].mxu0 %vm31_vm0, %v4038_v20 }
 0x951   :  { %3305 = vmatpush3.bf16.msra.mxu0 %v3633_v3 }
 0x952   :  { %3307 = vmatprep.subr.bf16.mxu0 %v3645_v8 }
 0x955   :  { %3309 = vmatpush3.bf16.msra.mxu0 %v3645_v8 }
 0x956   :  { %3319 = vmatprep.subr.bf16.mxu0 %v3633_v3 }
 0x9b2   :  { %v1443_v38 = vpop.permute.xlu0 %1442 }
 0x9b3   :  { %v1448_v34 = vsel %vm540_vm1, %v1437_v2, %v1443_v38 }
 0x9b4   :  { %v1439_v39 = vpop.permute.xlu1 %1438  ;;  %v1565_v35 = vsub.f32 1.0, %v1448_v34  ;;  %v1561_v40 = vmul.f32 %v1448_v34, %v3973_v54  ;;  %v4077_v54 = vld [vmem:[%s4423_s3] ss:$0 sm:$0xff] }
 0x9b5   :  { %v1447_v17 = vsel %vm540_vm1, %v3445_v63, %v1439_v39 }
 0x9b6   :  { %v1564_v13 = vsub.f32 1.0, %v1447_v17  ;;  %v1560_v24 = vmul.f32 %v1447_v17, %v3971_v33  ;;  %v259_v33 = vmul.f32 %v4070_v43, %v4053_v28 }
 0x9b8   :  { %v298_v25 = vadd.f32 %v4077_v54, %v259_v33  ;;  %v4126_v33 = vld [vmem:[%s4424_s4] ss:$0 sm:$0xff] }
 0x9e5   :  { %v3109_v23 = vpop.f32.mrb[14].mxu1 }
 0x9e6   :  { %v1553_v27 = vadd.f32 %v3109_v23, %v375_v22  ;;  %v1541_v53 = vpop.f32.mrb[15].mxu1 }
 0x9e7   :  { %v1552_v30 = vadd.f32 %v1541_v53, %v374_v26  ;;  %v64_v53 = vld [vmem:[%s4420_s0 + $0xa0] sm:$0xff] }
 0x9e8   :  { %3450 = vtanh.f32 %v1553_v27  ;;  %v63_v27 = vld [vmem:[%s4420_s0 + $0x98] sm:$0xff] }
 0x9e9   :  { %3452 = vtanh.f32 %v1552_v30 }
 0x9f2   :  { %v3451_v21 = vpop.eup %3450 }
 0x9f3   :  { %v3453_v36 = vpop.eup %3452  ;;  %v1569_v37 = vmul.f32 %v3451_v21, %v1565_v35 }
 0x9f4   :  { %v1568_v47 = vmul.f32 %v3453_v36, %v1564_v13 }
 0x9f5   :  { %v4061_v42 = vadd.f32 %v1569_v37, %v1561_v40 }
 0x9f6   :  { %v4059_v41 = vadd.f32 %v1568_v47, %v1560_v24 }
 0x9f8   :  { %3121 = vmatprep.mubr.msk.f32.mxu0 %vm31_vm0, %v4059_v41 }
 0x9f9   :  { %3122 = vmatmul.mubr.msk.f32.gmra.mrb[18].mxu0 %vm31_vm0, %v4061_v42 }
 0xa23   :  { %v3120_v45 = vpop.f32.mrb[16].mxu0 }
 0xa24   :  { %v1652_v10 = vpop.f32.mrb[17].mxu0 }
 0xa25   :  { %v1671_v48 = vadd.f32 %v1652_v10, %v298_v25  ;;  %v337_v25 = vmul.f32 %v4126_v33, %v4053_v28  ;;  %v4134_v10 = vld [vmem:[%s4426_s6] ss:$0 sm:$0xff] }
 0xa27   :  { %v2826_v49 = vmul.f32 -1.442695, %v1671_v48 }
 0xa29   :  { %3454 = vpow2.f32 %v2826_v49 }
 0xa33   :  { %v3455_v50 = vpop.eup %3454 }
 0xa34   :  { %v1687_v51 = vadd.f32 1.0, %v3455_v50 }
 0xa36   :  { %3456 = vrcp.f32 %v1687_v51  ;;  %v376_v51 = vadd.f32 %v4134_v10, %v337_v25  ;;  %v66_v25 = vld [vmem:[%s4420_s0 + $0xb0] sm:$0xff] }
 0xa40   :  { %v3457_v52 = vpop.eup %3456 }
 0xa41   :  { %1705 = vrot.lane.b32.xlu0 %v3457_v52, %s3580_s22  ;;  %v1700_v55 = vrot.slane %v3457_v52, 4 }
 0xa43   :  { %1701 = vrot.lane.b32.xlu1 %v1700_v55, %s3580_s22 }
 0xa45   :  { %169 = vperm.xlu0 %3356, %v62_v56  }
 0xa47   :  { %164 = vperm.xlu1 %3357, %v61_v57  }
 0xab3   :  { %v1706_v44 = vpop.permute.xlu0 %1705 }
 0xab4   :  { %v1718_v58 = vsel %vm540_vm1, %v1700_v55, %v1706_v44 }
 0xab5   :  { %v1702_v59 = vpop.permute.xlu1 %1701  ;;  %v1744_v16 = vmul.f32 %v1718_v58, %v4038_v20 }
 0xab6   :  { %v1717_v60 = vsel %vm540_vm1, %v3457_v52, %v1702_v59 }
 0xab7   :  { %v1743_v61 = vmul.f32 %v1717_v60, %v4036_v18 }
 0xab9   :  { %3132 = vmatprep.mubr.msk.f32.mxu1 %vm31_vm0, %v1743_v61 }
 0xaba   :  { %3133 = vmatmul.mubr.msk.f32.vlgmr.msra.gmra.mrb[16].mxu1 %vm31_vm0, %v1744_v16 }
 0xabb   :  { %3313 = vmatpush3.bf16.msra.mxu1 %v3678_v15 }
 0xabc   :  { %3315 = vmatprep.subr.bf16.mxu1 %v3703_v29 }
 0xabf   :  { %3317 = vmatpush3.bf16.msra.mxu1 %v3703_v29 }
 0xac0   :  { %3327 = vmatprep.subr.bf16.mxu1 %v3678_v15 }
 0xac4   :  { %v4098_v62 = vpop.permute.xlu0 %169 }
 0xac5   :  { %v261_v2 = vmul.f32 %v4070_v43, %v4098_v62 }
 0xac6   :  { %v165_v19 = vpop.permute.xlu1 %164 }
 0xac7   :  { %v260_v63 = vmul.f32 %v4070_v43, %v165_v19  ;;  %v300_v4 = vadd.f32 %v4077_v54, %v261_v2 }
 0xac9   :  { %v299_v0 = vadd.f32 %v4077_v54, %v260_v63 }
 0xacb   :  { %v1672_v46 = vadd.f32 %v3120_v45, %v299_v0  ;;  %v338_v45 = vmul.f32 %v4126_v33, %v165_v19 }
 0xacc   :  { %v3123_v1 = vpop.f32.mrb[18].mxu0 }
 0xacd   :  { %v2827_v5 = vmul.f32 -1.442695, %v1672_v46  ;;  %v1662_v6 = vpop.f32.mrb[19].mxu0  ;;  %v377_v48 = vadd.f32 %v4134_v10, %v338_v45 }
 0xace   :  { %v1673_v7 = vadd.f32 %v1662_v6, %v300_v4 }
 0xacf   :  { %3458 = vpow2.f32 %v2827_v5 }
 0xad0   :  { %v2828_v11 = vmul.f32 -1.442695, %v1673_v7 }
 0xad2   :  { %3460 = vpow2.f32 %v2828_v11 }
 0xad9   :  { %v3459_v14 = vpop.eup %3458 }
 0xada   :  { %v1688_v12 = vadd.f32 1.0, %v3459_v14 }
 0xadc   :  { %v3461_v9 = vpop.eup %3460  ;;  %3462 = vrcp.f32 %v1688_v12 }
 0xadd   :  { %v1689_v31 = vadd.f32 1.0, %v3461_v9 }
 0xadf   :  { %3464 = vrcp.f32 %v1689_v31 }
 0xae6   :  { %v3463_v32 = vpop.eup %3462 }
 0xae7   :  { %v1709_v22 = vrot.slane %v3463_v32, 4 }
 0xae9   :  { %v3465_v23 = vpop.eup %3464  ;;  %1710 = vrot.lane.b32.xlu1 %v1709_v22, %s3580_s22 }
 0xaea   :  { %v1722_v26 = vrot.slane %v3465_v23, 4 }
 0xaec   :  { %1723 = vrot.lane.b32.xlu0 %v1722_v26, %s3580_s22 }
 0xaed   :  { %1714 = vrot.lane.b32.xlu1 %v3463_v32, %s3580_s22 }
 0xaf0   :  { %1727 = vrot.lane.b32.xlu0 %v3465_v23, %s3580_s22 }
 0xaf1   :  { %174 = vperm.xlu1 %3357, %v63_v27  }
 0xaf4   :  { %179 = vperm.xlu0 %3356, %v64_v53  }
 0xb5b   :  { %v1711_v30 = vpop.permute.xlu1 %1710 }
 0xb5c   :  { %v1719_v38 = vsel %vm540_vm1, %v3463_v32, %v1711_v30 }
 0xb5d   :  { %v1745_v39 = vmul.f32 %v1719_v38, %v4059_v41 }
 0xb5e   :  { %v1724_v49 = vpop.permute.xlu0 %1723 }
 0xb5f   :  { %v1715_v34 = vpop.permute.xlu1 %1714  ;;  %3135 = vmatprep.mubr.msk.f32.mxu1 %vm31_vm0, %v1745_v39  ;;  %v1739_v59 = vsel %vm540_vm1, %v3465_v23, %v1724_v49 }
 0xb60   :  { %v1720_v17 = vsel %vm540_vm1, %v1709_v22, %v1715_v34  ;;  %v1856_v16 = vsub.f32 1.0, %v1739_v59  ;;  %v1852_v2 = vmul.f32 %v1739_v59, %v4036_v18 }
 0xb61   :  { %v1746_v35 = vmul.f32 %v1720_v17, %v4061_v42 }
 0xb62   :  { %v1728_v44 = vpop.permute.xlu0 %1727 }
 0xb63   :  { %3136 = vmatmul.mubr.msk.f32.gmra.mrb[18].mxu1 %vm31_vm0, %v1746_v35  ;;  %v1740_v58 = vsel %vm540_vm1, %v1722_v26, %v1728_v44 }
 0xb64   :  { %v1857_v60 = vsub.f32 1.0, %v1740_v58  ;;  %v1853_v46 = vmul.f32 %v1740_v58, %v4038_v20  ;;  %v339_v20 = vmul.f32 %v4126_v33, %v4098_v62 }
 0xb66   :  { %v378_v7 = vadd.f32 %v4134_v10, %v339_v20 }
 0xb70   :  { %v175_v21 = vpop.permute.xlu1 %174 }
 0xb71   :  { %v262_v13 = vmul.f32 %v4070_v43, %v175_v21  ;;  %v340_v18 = vmul.f32 %v4126_v33, %v175_v21 }
 0xb73   :  { %v301_v36 = vadd.f32 %v4077_v54, %v262_v13  ;;  %v379_v5 = vadd.f32 %v4134_v10, %v340_v18  ;;  %v4161_v12 = vpop.permute.xlu0 %179 }
 0xb74   :  { %v263_v21 = vmul.f32 %v4070_v43, %v4161_v12 }
 0xb75   :  { %v1674_v37 = vadd.f32 %v3123_v1, %v301_v36 }
 0xb76   :  { %v302_v36 = vadd.f32 %v4077_v54, %v263_v21 }
 0xb77   :  { %v2829_v24 = vmul.f32 -1.442695, %v1674_v37 }
 0xb79   :  { %3466 = vpow2.f32 %v2829_v24 }
 0xb83   :  { %v3467_v47 = vpop.eup %3466 }
 0xb84   :  { %v1690_v40 = vadd.f32 1.0, %v3467_v47 }
 0xb86   :  { %3468 = vrcp.f32 %v1690_v40 }
 0xb8d   :  { %v3134_v50 = vpop.f32.mrb[16].mxu1 }
 0xb8e   :  { %v1845_v52 = vadd.f32 %v3134_v50, %v377_v48  ;;  %v1825_v55 = vpop.f32.mrb[17].mxu1  ;;  %v65_v48 = vld [vmem:[%s4420_s0 + $0xa8] sm:$0xff] }
 0xb8f   :  { %v1844_v56 = vadd.f32 %v1825_v55, %v376_v51 }
 0xb90   :  { %v3469_v57 = vpop.eup %3468  ;;  %3470 = vtanh.f32 %v1845_v52 }
 0xb91   :  { %3472 = vtanh.f32 %v1844_v56  ;;  %1736 = vrot.lane.b32.xlu0 %v3469_v57, %s3580_s22  ;;  %v1731_v28 = vrot.slane %v3469_v57, 4 }
 0xb93   :  { %1732 = vrot.lane.b32.xlu1 %v1731_v28, %s3580_s22 }
 0xb9a   :  { %v3471_v61 = vpop.eup %3470 }
 0xb9b   :  { %v3473_v19 = vpop.eup %3472  ;;  %v1861_v63 = vmul.f32 %v3471_v61, %v1857_v60 }
 0xb9c   :  { %v1860_v0 = vmul.f32 %v3473_v19, %v1856_v16 }
 0xb9d   :  { %v4146_v4 = vadd.f32 %v1861_v63, %v1853_v46 }
 0xb9e   :  { %v4144_v1 = vadd.f32 %v1860_v0, %v1852_v2 }
 0xba0   :  { %3146 = vmatprep.mubr.msk.f32.mxu0 %vm31_vm0, %v4144_v1 }
 0xba1   :  { %3147 = vmatmul.mubr.msk.f32.vlgmr.msra.gmra.mrb[20].mxu0 %vm31_vm0, %v4146_v4 }
 0xba2   :  { %3321 = vmatpush3.bf16.msra.mxu0 %v3633_v3 }
 0xba3   :  { %3323 = vmatprep.subr.bf16.mxu0 %v3645_v8 }
 0xba6   :  { %3325 = vmatpush3.bf16.msra.mxu0 %v3645_v8 }
 0xba7   :  { %3335 = vmatprep.subr.bf16.mxu0 %v3633_v3 }
 0xc03   :  { %v1737_v31 = vpop.permute.xlu0 %1736 }
 0xc04   :  { %v1742_v22 = vsel %vm540_vm1, %v1731_v28, %v1737_v31  ;;  %v68_v31 = vld [vmem:[%s4420_s0 + $0xc0] sm:$0xff] }
 0xc05   :  { %v1733_v32 = vpop.permute.xlu1 %1732  ;;  %v1859_v26 = vsub.f32 1.0, %v1742_v22  ;;  %v1855_v34 = vmul.f32 %v1742_v22, %v4061_v42 }
 0xc06   :  { %v1741_v23 = vsel %vm540_vm1, %v3469_v57, %v1733_v32 }
 0xc07   :  { %v1858_v27 = vsub.f32 1.0, %v1741_v23  ;;  %v1854_v38 = vmul.f32 %v1741_v23, %v4059_v41 }
 0xc36   :  { %v3137_v6 = vpop.f32.mrb[18].mxu1 }
 0xc37   :  { %v1847_v11 = vadd.f32 %v3137_v6, %v379_v5  ;;  %v1835_v14 = vpop.f32.mrb[19].mxu1 }
 0xc38   :  { %v1846_v9 = vadd.f32 %v1835_v14, %v378_v7 }
 0xc39   :  { %3474 = vtanh.f32 %v1847_v11 }
 0xc3a   :  { %3476 = vtanh.f32 %v1846_v9  ;;  %v67_v9 = vld [vmem:[%s4420_s0 + $0xb8] sm:$0xff] }
 0xc43   :  { %v3475_v62 = vpop.eup %3474 }
 0xc44   :  { %v3477_v53 = vpop.eup %3476  ;;  %v1863_v30 = vmul.f32 %v3475_v62, %v1859_v26 }
 0xc45   :  { %v1862_v39 = vmul.f32 %v3477_v53, %v1858_v27 }
 0xc46   :  { %v4169_v35 = vadd.f32 %v1863_v30, %v1855_v34 }
 0xc47   :  { %v4167_v17 = vadd.f32 %v1862_v39, %v1854_v38 }
 0xc49   :  { %3149 = vmatprep.mubr.msk.f32.mxu0 %vm31_vm0, %v4167_v17 }
 0xc4a   :  { %3150 = vmatmul.mubr.msk.f32.gmra.mrb[22].mxu0 %vm31_vm0, %v4169_v35 }
 0xc74   :  { %v3148_v13 = vpop.f32.mrb[20].mxu0 }
 0xc75   :  { %v1946_v41 = vpop.f32.mrb[21].mxu0 }
 0xc76   :  { %v1965_v37 = vadd.f32 %v1946_v41, %v302_v36  ;;  %v341_v41 = vmul.f32 %v4126_v33, %v4161_v12 }
 0xc78   :  { %v2838_v24 = vmul.f32 -1.442695, %v1965_v37 }
 0xc7a   :  { %3478 = vpow2.f32 %v2838_v24 }
 0xc84   :  { %v3479_v42 = vpop.eup %3478 }
 0xc85   :  { %v1981_v47 = vadd.f32 1.0, %v3479_v42 }
 0xc87   :  { %3480 = vrcp.f32 %v1981_v47  ;;  %v380_v47 = vadd.f32 %v4134_v10, %v341_v41 }
 0xc91   :  { %v3481_v40 = vpop.eup %3480 }
 0xc92   :  { %1999 = vrot.lane.b32.xlu0 %v3481_v40, %s3580_s22  ;;  %v1994_v45 = vrot.slane %v3481_v40, 4 }
 0xc94   :  { %1995 = vrot.lane.b32.xlu1 %v1994_v45, %s3580_s22 }
 0xc96   :  { %189 = vperm.xlu0 %3356, %v66_v25  }
 0xc98   :  { %184 = vperm.xlu1 %3357, %v65_v48  }
 0xd04   :  { %v2000_v49 = vpop.permute.xlu0 %1999 }
 0xd05   :  { %v2012_v50 = vsel %vm540_vm1, %v1994_v45, %v2000_v49 }
 0xd06   :  { %v1996_v51 = vpop.permute.xlu1 %1995  ;;  %v2038_v56 = vmul.f32 %v2012_v50, %v4146_v4 }
 0xd07   :  { %v2011_v52 = vsel %vm540_vm1, %v3481_v40, %v1996_v51 }
 0xd08   :  { %v2037_v55 = vmul.f32 %v2011_v52, %v4144_v1 }
 0xd0a   :  { %3160 = vmatprep.mubr.msk.f32.mxu1 %vm31_vm0, %v2037_v55 }
 0xd0b   :  { %3161 = vmatmul.mubr.msk.f32.vlgmr.msra.gmra.mrb[20].mxu1 %vm31_vm0, %v2038_v56 }
 0xd0c   :  { %3329 = vmatpush3.bf16.msra.mxu1 %v3678_v15 }
 0xd0d   :  { %3331 = vmatprep.subr.bf16.mxu1 %v3703_v29 }
 0xd10   :  { %3333 = vmatpush3.bf16.msra.mxu1 %v3703_v29 }
 0xd11   :  { %3343 = vmatprep.subr.bf16.mxu1 %v3678_v15 }
 0xd15   :  { %v4196_v57 = vpop.permute.xlu0 %189 }
 0xd16   :  { %v265_v58 = vmul.f32 %v4070_v43, %v4196_v57 }
 0xd17   :  { %v185_v28 = vpop.permute.xlu1 %184 }
 0xd18   :  { %v264_v44 = vmul.f32 %v4070_v43, %v185_v28  ;;  %v304_v16 = vadd.f32 %v4077_v54, %v265_v58  ;;  %v342_v36 = vmul.f32 %v4126_v33, %v185_v28 }
 0xd1a   :  { %v303_v59 = vadd.f32 %v4077_v54, %v264_v44  ;;  %v381_v37 = vadd.f32 %v4134_v10, %v342_v36  ;;  %v70_v36 = vld [vmem:[%s4420_s0 + $0xd0] sm:$0xff] }
 0xd1c   :  { %v1966_v60 = vadd.f32 %v3148_v13, %v303_v59 }
 0xd1d   :  { %v3151_v61 = vpop.f32.mrb[22].mxu0 }
 0xd1e   :  { %v2839_v19 = vmul.f32 -1.442695, %v1966_v60  ;;  %v1956_v63 = vpop.f32.mrb[23].mxu0 }
 0xd1f   :  { %v1967_v2 = vadd.f32 %v1956_v63, %v304_v16 }
 0xd20   :  { %3482 = vpow2.f32 %v2839_v19 }
 0xd21   :  { %v2840_v0 = vmul.f32 -1.442695, %v1967_v2 }
 0xd23   :  { %3484 = vpow2.f32 %v2840_v0 }
 0xd2a   :  { %v3483_v46 = vpop.eup %3482 }
 0xd2b   :  { %v1982_v18 = vadd.f32 1.0, %v3483_v46 }
 0xd2d   :  { %v3485_v20 = vpop.eup %3484  ;;  %3486 = vrcp.f32 %v1982_v18 }
 0xd2e   :  { %v1983_v5 = vadd.f32 1.0, %v3485_v20 }
 0xd30   :  { %3488 = vrcp.f32 %v1983_v5 }
 0xd37   :  { %v3487_v6 = vpop.eup %3486 }
 0xd38   :  { %v2003_v7 = vrot.slane %v3487_v6, 4 }
 0xd3a   :  { %v3489_v11 = vpop.eup %3488  ;;  %2004 = vrot.lane.b32.xlu1 %v2003_v7, %s3580_s22 }
 0xd3b   :  { %v2016_v14 = vrot.slane %v3489_v11, 4 }
 0xd3d   :  { %2017 = vrot.lane.b32.xlu0 %v2016_v14, %s3580_s22 }
 0xd3e   :  { %2008 = vrot.lane.b32.xlu1 %v3487_v6, %s3580_s22 }
 0xd41   :  { %2021 = vrot.lane.b32.xlu0 %v3489_v11, %s3580_s22 }
 0xd42   :  { %194 = vperm.xlu1 %3357, %v67_v9  }
 0xd45   :  { %199 = vperm.xlu0 %3356, %v68_v31  }
 0xdac   :  { %v2005_v32 = vpop.permute.xlu1 %2004 }
 0xdad   :  { %v2013_v22 = vsel %vm540_vm1, %v3487_v6, %v2005_v32 }
 0xdae   :  { %v2039_v23 = vmul.f32 %v2013_v22, %v4167_v17 }
 0xdaf   :  { %v2018_v24 = vpop.permute.xlu0 %2017 }
 0xdb0   :  { %v2009_v26 = vpop.permute.xlu1 %2008  ;;  %3163 = vmatprep.mubr.msk.f32.mxu1 %vm31_vm0, %v2039_v23  ;;  %v2033_v51 = vsel %vm540_vm1, %v3489_v11, %v2018_v24 }
 0xdb1   :  { %v2014_v62 = vsel %vm540_vm1, %v2003_v7, %v2009_v26  ;;  %v2150_v56 = vsub.f32 1.0, %v2033_v51  ;;  %v2146_v58 = vmul.f32 %v2033_v51, %v4144_v1 }
 0xdb2   :  { %v2040_v27 = vmul.f32 %v2014_v62, %v4169_v35 }
 0xdb3   :  { %v2022_v50 = vpop.permute.xlu0 %2021 }
 0xdb4   :  { %3164 = vmatmul.mubr.msk.f32.gmra.mrb[22].mxu1 %vm31_vm0, %v2040_v27  ;;  %v2034_v12 = vsel %vm540_vm1, %v2016_v14, %v2022_v50 }
 0xdb5   :  { %v2151_v52 = vsub.f32 1.0, %v2034_v12  ;;  %v2147_v60 = vmul.f32 %v2034_v12, %v4146_v4  ;;  %v343_v4 = vmul.f32 %v4126_v33, %v4196_v57 }
 0xdb7   :  { %v382_v2 = vadd.f32 %v4134_v10, %v343_v4 }
 0xdc1   :  { %v195_v53 = vpop.permute.xlu1 %194 }
 0xdc2   :  { %v266_v30 = vmul.f32 %v4070_v43, %v195_v53  ;;  %v344_v1 = vmul.f32 %v4126_v33, %v195_v53 }
 0xdc4   :  { %v305_v38 = vadd.f32 %v4077_v54, %v266_v30  ;;  %v383_v19 = vadd.f32 %v4134_v10, %v344_v1  ;;  %v4248_v18 = vpop.permute.xlu0 %199 }
 0xdc5   :  { %v267_v62 = vmul.f32 %v4070_v43, %v4248_v18 }
 0xdc6   :  { %v1968_v39 = vadd.f32 %v3151_v61, %v305_v38 }
 0xdc7   :  { %v306_v53 = vadd.f32 %v4077_v54, %v267_v62 }
 0xdc8   :  { %v2841_v34 = vmul.f32 -1.442695, %v1968_v39 }
 0xdca   :  { %3490 = vpow2.f32 %v2841_v34 }
 0xdd4   :  { %v3491_v21 = vpop.eup %3490 }
 0xdd5   :  { %v1984_v13 = vadd.f32 1.0, %v3491_v21 }
 0xdd7   :  { %3492 = vrcp.f32 %v1984_v13  ;;  %v69_v13 = vld [vmem:[%s4420_s0 + $0xc8] sm:$0xff] }
 0xdde   :  { %v3162_v42 = vpop.f32.mrb[20].mxu1 }
 0xddf   :  { %v2139_v40 = vadd.f32 %v3162_v42, %v381_v37  ;;  %v2119_v45 = vpop.f32.mrb[21].mxu1 }
 0xde0   :  { %v2138_v25 = vadd.f32 %v2119_v45, %v380_v47 }
 0xde1   :  { %v3493_v48 = vpop.eup %3492  ;;  %3494 = vtanh.f32 %v2139_v40 }
 0xde2   :  { %3496 = vtanh.f32 %v2138_v25  ;;  %2030 = vrot.lane.b32.xlu0 %v3493_v48, %s3580_s22  ;;  %v2025_v49 = vrot.slane %v3493_v48, 4 }
 0xde4   :  { %2026 = vrot.lane.b32.xlu1 %v2025_v49, %s3580_s22 }
 0xdeb   :  { %v3495_v55 = vpop.eup %3494 }
 0xdec   :  { %v3497_v28 = vpop.eup %3496  ;;  %v2155_v44 = vmul.f32 %v3495_v55, %v2151_v52 }
 0xded   :  { %v2154_v59 = vmul.f32 %v3497_v28, %v2150_v56 }
 0xdee   :  { %v4234_v16 = vadd.f32 %v2155_v44, %v2147_v60 }
 0xdef   :  { %v4232_v61 = vadd.f32 %v2154_v59, %v2146_v58 }
 0xdf1   :  { %3174 = vmatprep.mubr.msk.f32.mxu0 %vm31_vm0, %v4232_v61 }
 0xdf2   :  { %3175 = vmatmul.mubr.msk.f32.vlgmr.msra.gmra.mrb[24].mxu0 %vm31_vm0, %v4234_v16 }
 0xdf3   :  { %3337 = vmatpush3.bf16.msra.mxu0 %v3633_v3 }
 0xdf4   :  { %3339 = vmatprep.subr.bf16.mxu0 %v3645_v8 }
 0xdf7   :  { %3341 = vmatpush3.bf16.msra.mxu0 %v3645_v8 }
 0xe54   :  { %v2031_v3 = vpop.permute.xlu0 %2030 }
 0xe55   :  { %v2036_v8 = vsel %vm540_vm1, %v2025_v49, %v2031_v3 }
 0xe56   :  { %v2027_v5 = vpop.permute.xlu1 %2026  ;;  %v2153_v7 = vsub.f32 1.0, %v2036_v8  ;;  %v2149_v22 = vmul.f32 %v2036_v8, %v4169_v35 }
 0xe57   :  { %v2035_v6 = vsel %vm540_vm1, %v3493_v48, %v2027_v5 }
 0xe58   :  { %v2152_v11 = vsub.f32 1.0, %v2035_v6  ;;  %v2148_v31 = vmul.f32 %v2035_v6, %v4167_v17 }
 0xe87   :  { %v3165_v63 = vpop.f32.mrb[22].mxu1 }
 0xe88   :  { %v2141_v0 = vadd.f32 %v3165_v63, %v383_v19  ;;  %v2129_v46 = vpop.f32.mrb[23].mxu1  ;;  %v72_v63 = vld [vmem:[%s4420_s0 + $0xe0] sm:$0xff] }
 0xe89   :  { %v2140_v20 = vadd.f32 %v2129_v46, %v382_v2  ;;  %v71_v2 = vld [vmem:[%s4420_s0 + $0xd8] sm:$0xff] }
 0xe8a   :  { %3498 = vtanh.f32 %v2141_v0  ;;  %v73_v0 = vld [vmem:[%s4420_s0 + $0xe8] sm:$0xff] }
 0xe8b   :  { %3500 = vtanh.f32 %v2140_v20 }
 0xe94   :  { %v3499_v57 = vpop.eup %3498 }
 0xe95   :  { %v3501_v14 = vpop.eup %3500  ;;  %v2157_v9 = vmul.f32 %v3499_v57, %v2153_v7 }
 0xe96   :  { %v2156_v32 = vmul.f32 %v3501_v14, %v2152_v11 }
 0xe97   :  { %v4256_v26 = vadd.f32 %v2157_v9, %v2149_v22 }
 0xe98   :  { %v4254_v23 = vadd.f32 %v2156_v32, %v2148_v31 }
 0xe9a   :  { %3177 = vmatprep.mubr.msk.f32.mxu0 %vm31_vm0, %v4254_v23 }
 0xe9b   :  { %3178 = vmatmul.mubr.msk.f32.gmra.mrb[26].mxu0 %vm31_vm0, %v4256_v26 }
 0xec5   :  { %v3176_v27 = vpop.f32.mrb[24].mxu0 }
 0xec6   :  { %v2240_v17 = vpop.f32.mrb[25].mxu0 }
 0xec7   :  { %v2259_v30 = vadd.f32 %v2240_v17, %v306_v53  ;;  %v345_v53 = vmul.f32 %v4126_v33, %v4248_v18 }
 0xec9   :  { %v2850_v38 = vmul.f32 -1.442695, %v2259_v30 }
 0xecb   :  { %3502 = vpow2.f32 %v2850_v38  ;;  %v384_v38 = vadd.f32 %v4134_v10, %v345_v53 }
 0xed5   :  { %v3503_v35 = vpop.eup %3502 }
 0xed6   :  { %v2275_v39 = vadd.f32 1.0, %v3503_v35 }
 0xed8   :  { %3504 = vrcp.f32 %v2275_v39 }
 0xee2   :  { %v3505_v34 = vpop.eup %3504 }
 0xee3   :  { %2293 = vrot.lane.b32.xlu0 %v3505_v34, %s3580_s22  ;;  %v2288_v21 = vrot.slane %v3505_v34, 4 }
 0xee5   :  { %2289 = vrot.lane.b32.xlu1 %v2288_v21, %s3580_s22 }
 0xee7   :  { %204 = vperm.xlu0 %3356, %v69_v13  }
 0xee9   :  { %209 = vperm.xlu1 %3357, %v70_v36  }
 0xf55   :  { %v2294_v41 = vpop.permute.xlu0 %2293 }
 0xf56   :  { %v2306_v37 = vsel %vm540_vm1, %v2288_v21, %v2294_v41 }
 0xf57   :  { %v2290_v24 = vpop.permute.xlu1 %2289  ;;  %v2332_v40 = vmul.f32 %v2306_v37, %v4234_v16 }
 0xf58   :  { %v2305_v42 = vsel %vm540_vm1, %v3505_v34, %v2290_v24 }
 0xf59   :  { %v2331_v47 = vmul.f32 %v2305_v42, %v4232_v61 }
 0xf5b   :  { %3188 = vmatprep.mubr.msk.f32.mxu1 %vm31_vm0, %v2331_v47 }
 0xf5c   :  { %3189 = vmatmul.mubr.msk.f32.vlgmr.msra.gmra.mrb[24].mxu1 %vm31_vm0, %v2332_v40 }
 0xf5d   :  { %3345 = vmatpush3.bf16.msra.mxu1 %v3678_v15 }
 0xf5e   :  { %3347 = vmatprep.subr.bf16.mxu1 %v3703_v29 }
 0xf61   :  { %3349 = vmatpush3.bf16.msra.mxu1 %v3703_v29 }
 0xf66   :  { %v205_v45 = vpop.permute.xlu0 %204 }
 0xf67   :  { %v268_v25 = vmul.f32 %v4070_v43, %v205_v45 }
 0xf68   :  { %v4283_v48 = vpop.permute.xlu1 %209 }
 0xf69   :  { %v307_v49 = vadd.f32 %v4077_v54, %v268_v25  ;;  %v269_v50 = vmul.f32 %v4070_v43, %v4283_v48 }
 0xf6b   :  { %v2260_v12 = vadd.f32 %v3176_v27, %v307_v49  ;;  %v308_v55 = vadd.f32 %v4077_v54, %v269_v50  ;;  %v346_v27 = vmul.f32 %v4126_v33, %v205_v45 }
 0xf6d   :  { %v2851_v51 = vmul.f32 -1.442695, %v2260_v12  ;;  %v385_v17 = vadd.f32 %v4134_v10, %v346_v27 }
 0xf6e   :  { %v3179_v52 = vpop.f32.mrb[26].mxu0 }
 0xf6f   :  { %v2250_v15 = vpop.f32.mrb[27].mxu0  ;;  %3506 = vpow2.f32 %v2851_v51  ;;  %v347_v51 = vmul.f32 %v4126_v33, %v4283_v48 }
 0xf70   :  { %v2261_v56 = vadd.f32 %v2250_v15, %v308_v55 }
 0xf72   :  { %v2852_v28 = vmul.f32 -1.442695, %v2261_v56 }
 0xf74   :  { %3508 = vpow2.f32 %v2852_v28 }
 0xf79   :  { %v3507_v29 = vpop.eup %3506 }
 0xf7a   :  { %v2276_v58 = vadd.f32 1.0, %v3507_v29 }
 0xf7e   :  { %v3509_v44 = vpop.eup %3508 }
 0xf7f   :  { %v2277_v59 = vadd.f32 1.0, %v3509_v44 }
 0xf81   :  { %3510 = vrcp.f32 %v2277_v59 }
 0xf82   :  { %3512 = vrcp.f32 %v2276_v58 }
 0xf8b   :  { %v3511_v60 = vpop.eup %3510 }
 0xf8c   :  { %2315 = vrot.lane.b32.xlu0 %v3511_v60, %s3580_s22  ;;  %v2310_v1 = vrot.slane %v3511_v60, 4  ;;  %v3513_v4 = vpop.eup %3512 }
 0xf8d   :  { %v2297_v19 = vrot.slane %v3513_v4, 4 }
 0xf8e   :  { %2311 = vrot.lane.b32.xlu1 %v2310_v1, %s3580_s22 }
 0xf90   :  { %2302 = vrot.lane.b32.xlu0 %v3513_v4, %s3580_s22 }
 0xf92   :  { %2298 = vrot.lane.b32.xlu1 %v2297_v19, %s3580_s22 }
 0xf94   :  { %219 = vperm.xlu0 %3356, %v72_v63  }
 0xf96   :  { %214 = vperm.xlu1 %3357, %v71_v2  }
 0xf9a   :  { %224 = vperm.xlu1 %3357, %v73_v0  }
 0xffe   :  { %v2316_v46 = vpop.permute.xlu0 %2315 }
 0xfff   :  { %v2328_v36 = vsel %vm540_vm1, %v2310_v1, %v2316_v46 }
0x1000   :  { %v2312_v20 = vpop.permute.xlu1 %2311  ;;  %v2445_v41 = vsub.f32 1.0, %v2328_v36  ;;  %v2441_v25 = vmul.f32 %v2328_v36, %v4234_v16  ;;  %v386_v16 = vadd.f32 %v4134_v10, %v347_v51 }
0x1001   :  { %v2327_v18 = vsel %vm540_vm1, %v3511_v60, %v2312_v20 }
0x1002   :  { %v2303_v3 = vpop.permute.xlu0 %2302  ;;  %v2444_v24 = vsub.f32 1.0, %v2327_v18  ;;  %v2440_v40 = vmul.f32 %v2327_v18, %v4232_v61 }
0x1003   :  { %v2308_v5 = vsel %vm540_vm1, %v2297_v19, %v2303_v3 }
0x1004   :  { %v2299_v8 = vpop.permute.xlu1 %2298  ;;  %v2334_v57 = vmul.f32 %v2308_v5, %v4256_v26 }
0x1005   :  { %v2307_v6 = vsel %vm540_vm1, %v3513_v4, %v2299_v8 }
0x1006   :  { %v2333_v7 = vmul.f32 %v2307_v6, %v4254_v23 }
0x1008   :  { %3191 = vmatprep.mubr.msk.f32.mxu1 %vm31_vm0, %v2333_v7 }
0x1009   :  { %3192 = vmatmul.mubr.msk.f32.gmra.mrb[26].mxu1 %vm31_vm0, %v2334_v57 }
0x1013   :  { %v4336_v29 = vpop.permute.xlu0 %219 }
0x1014   :  { %v271_v8 = vmul.f32 %v4070_v43, %v4336_v29 }
0x1015   :  { %v215_v11 = vpop.permute.xlu1 %214 }
0x1016   :  { %v270_v14 = vmul.f32 %v4070_v43, %v215_v11  ;;  %v348_v12 = vmul.f32 %v4126_v33, %v215_v11 }
0x1018   :  { %v309_v9 = vadd.f32 %v4077_v54, %v270_v14  ;;  %v387_v61 = vadd.f32 %v4134_v10, %v348_v12 }
0x1019   :  { %v4334_v56 = vpop.permute.xlu1 %224 }
0x101a   :  { %v2262_v31 = vadd.f32 %v3179_v52, %v309_v9  ;;  %v272_v5 = vmul.f32 %v4070_v43, %v4334_v56 }
0x101c   :  { %v2853_v32 = vmul.f32 -1.442695, %v2262_v31 }
0x101e   :  { %3514 = vpow2.f32 %v2853_v32 }
0x1028   :  { %v3515_v22 = vpop.eup %3514 }
0x1029   :  { %v2278_v62 = vadd.f32 1.0, %v3515_v22 }
0x102b   :  { %3516 = vrcp.f32 %v2278_v62 }
0x102f   :  { %v3190_v30 = vpop.f32.mrb[24].mxu1 }
0x1030   :  { %v2433_v35 = vadd.f32 %v3190_v30, %v385_v17  ;;  %v2413_v39 = vpop.f32.mrb[25].mxu1 }
0x1031   :  { %v2432_v34 = vadd.f32 %v2413_v39, %v384_v38  ;;  %v75_v38 = vld [vmem:[%s4420_s0 + $0xf8] sm:$0xff] }
0x1032   :  { %3518 = vtanh.f32 %v2433_v35  ;;  %v74_v35 = vld [vmem:[%s4420_s0 + $0xf0] sm:$0xff]  ;;  %s3581_s0 = smov [#allocation2]  }
0x1033   :  { %3520 = vtanh.f32 %v2432_v34 }
0x1035   :  { %v3517_v21 = vpop.eup %3516 }
0x1036   :  { %2324 = vrot.lane.b32.xlu1 %v3517_v21, %s3580_s22  ;;  %v2319_v13 = vrot.slane %v3517_v21, 4 }
0x1038   :  { %2320 = vrot.lane.b32.xlu0 %v2319_v13, %s3580_s22 }
0x103c   :  { %v3519_v37 = vpop.eup %3518 }
0x103d   :  { %v3521_v42 = vpop.eup %3520  ;;  %v2449_v47 = vmul.f32 %v3519_v37, %v2445_v41 }
0x103e   :  { %v2448_v45 = vmul.f32 %v3521_v42, %v2444_v24 }
0x103f   :  { %v4323_v50 = vadd.f32 %v2449_v47, %v2441_v25 }
0x1040   :  { %v4321_v49 = vadd.f32 %v2448_v45, %v2440_v40 }
0x1042   :  { %3202 = vmatprep.mubr.msk.f32.mxu0 %vm31_vm0, %v4321_v49 }
0x1043   :  { %3203 = vmatmul.mubr.msk.f32.vlgmr.msra.gmra.mrb[28].mxu0 %vm31_vm0, %v4323_v50 }
0x10a8   :  { %v2325_v44 = vpop.permute.xlu1 %2324 }
0x10a9   :  { %v2330_v59 = vsel %vm540_vm1, %v2319_v13, %v2325_v44 }
0x10aa   :  { %v2321_v58 = vpop.permute.xlu0 %2320  ;;  %v2447_v60 = vsub.f32 1.0, %v2330_v59  ;;  %v2443_v46 = vmul.f32 %v2330_v59, %v4256_v26  ;;  %v310_v26 = vadd.f32 %v4077_v54, %v271_v8 }
0x10ab   :  { %v2329_v48 = vsel %vm540_vm1, %v3517_v21, %v2321_v58 }
0x10ac   :  { %v2446_v4 = vsub.f32 1.0, %v2329_v48  ;;  %v2442_v2 = vmul.f32 %v2329_v48, %v4254_v23  ;;  %v311_v23 = vadd.f32 %v4077_v54, %v272_v5 }
0x10dc   :  { %v3193_v52 = vpop.f32.mrb[26].mxu1 }
0x10dd   :  { %v2435_v55 = vadd.f32 %v3193_v52, %v387_v61  ;;  %v2423_v15 = vpop.f32.mrb[27].mxu1 }
0x10de   :  { %v2434_v28 = vadd.f32 %v2423_v15, %v386_v16 }
0x10df   :  { %3522 = vtanh.f32 %v2435_v55 }
0x10e0   :  { %3524 = vtanh.f32 %v2434_v28 }
0x10e9   :  { %v3523_v1 = vpop.eup %3522 }
0x10ea   :  { %v3525_v19 = vpop.eup %3524  ;;  %v2451_v63 = vmul.f32 %v3523_v1, %v2447_v60 }
0x10eb   :  { %v2450_v0 = vmul.f32 %v3525_v19, %v2446_v4 }
0x10ec   :  { %v4344_v3 = vadd.f32 %v2451_v63, %v2443_v46  ;;  %v350_v63 = vmul.f32 %v4126_v33, %v4334_v56 }
0x10ed   :  { %v4342_v20 = vadd.f32 %v2450_v0, %v2442_v2  ;;  %v349_v2 = vmul.f32 %v4126_v33, %v4336_v29 }
0x10ee   :  { %v389_v46 = vadd.f32 %v4134_v10, %v350_v63 }
0x10ef   :  { %3205 = vmatprep.mubr.msk.f32.mxu0 %vm31_vm0, %v4342_v20 }
0x10f0   :  { %3206 = vmatmul.mubr.msk.f32.gmra.mrb[30].mxu0 %vm31_vm0, %v4344_v3 }
0x1116   :  { %v3204_v6 = vpop.f32.mrb[28].mxu0 }
0x1117   :  { %v2554_v7 = vadd.f32 %v3204_v6, %v311_v23  ;;  %v2534_v57 = vpop.f32.mrb[29].mxu0  ;;  %v388_v23 = vadd.f32 %v4134_v10, %v349_v2 }
0x1118   :  { %v2553_v11 = vadd.f32 %v2534_v57, %v310_v26 }
0x1119   :  { %v2863_v14 = vmul.f32 -1.442695, %v2554_v7 }
0x111a   :  { %v2862_v9 = vmul.f32 -1.442695, %v2553_v11 }
0x111b   :  { %3526 = vpow2.f32 %v2863_v14 }
0x111c   :  { %3528 = vpow2.f32 %v2862_v9 }
0x1125   :  { %v3527_v31 = vpop.eup %3526 }
0x1126   :  { %v3529_v32 = vpop.eup %3528  ;;  %v2570_v22 = vadd.f32 1.0, %v3527_v31 }
0x1127   :  { %v2569_v62 = vadd.f32 1.0, %v3529_v32 }
0x1129   :  { %3530 = vrcp.f32 %v2569_v62 }
0x112a   :  { %3532 = vrcp.f32 %v2570_v22 }
0x1133   :  { %v3531_v27 = vpop.eup %3530 }
0x1134   :  { %2587 = vrot.lane.b32.xlu1 %v3531_v27, %s3580_s22  ;;  %v2582_v53 = vrot.slane %v3531_v27, 4  ;;  %v3533_v17 = vpop.eup %3532 }
0x1135   :  { %v2591_v30 = vrot.slane %v3533_v17, 4 }
0x1136   :  { %2583 = vrot.lane.b32.xlu0 %v2582_v53, %s3580_s22 }
0x1138   :  { %2596 = vrot.lane.b32.xlu1 %v3533_v17, %s3580_s22 }
0x113a   :  { %2592 = vrot.lane.b32.xlu0 %v2591_v30, %s3580_s22 }
0x113c   :  { %234 = vperm.xlu1 %3357, %v75_v38  }
0x113e   :  { %229 = vperm.xlu0 %3356, %v74_v35  }
0x11a6   :  { %v2588_v39 = vpop.permute.xlu1 %2587 }
0x11a7   :  { %v2600_v34 = vsel %vm540_vm1, %v2582_v53, %v2588_v39 }
0x11a8   :  { %v2584_v21 = vpop.permute.xlu0 %2583  ;;  %v2626_v41 = vmul.f32 %v2600_v34, %v4323_v50 }
0x11a9   :  { %v2599_v13 = vsel %vm540_vm1, %v3531_v27, %v2584_v21 }
0x11aa   :  { %v2625_v36 = vmul.f32 %v2599_v13, %v4321_v49  ;;  %v2597_v18 = vpop.permute.xlu1 %2596 }
0x11ab   :  { %v2602_v37 = vsel %vm540_vm1, %v2591_v30, %v2597_v18 }
0x11ac   :  { %3216 = vmatprep.mubr.msk.f32.mxu1 %vm31_vm0, %v2625_v36  ;;  %v2593_v24 = vpop.permute.xlu0 %2592  ;;  %v2628_v40 = vmul.f32 %v2602_v37, %v4344_v3 }
0x11ad   :  { %v2601_v42 = vsel %vm540_vm1, %v3533_v17, %v2593_v24  ;;  %3217 = vmatmul.mubr.msk.f32.vlgmr.msra.gmra.mrb[28].mxu1 %vm31_vm0, %v2626_v41 }
0x11ae   :  { %v2627_v47 = vmul.f32 %v2601_v42, %v4342_v20 }
0x11b0   :  { %3219 = vmatprep.mubr.msk.f32.mxu1 %vm31_vm0, %v2627_v47 }
0x11b1   :  { %3220 = vmatmul.mubr.msk.f32.gmra.mrb[30].mxu1 %vm31_vm0, %v2628_v40 }
0x11bb   :  { %v235_v45 = vpop.permute.xlu1 %234 }
0x11bc   :  { %v274_v12 = vmul.f32 %v4070_v43, %v235_v45  ;;  %v352_v0 = vmul.f32 %v4126_v33, %v235_v45 }
0x11bd   :  { %v230_v25 = vpop.permute.xlu0 %229 }
0x11be   :  { %v273_v51 = vmul.f32 %v4070_v43, %v230_v25  ;;  %v313_v61 = vadd.f32 %v4077_v54, %v274_v12  ;;  %v351_v5 = vmul.f32 %v4126_v33, %v230_v25  ;;  %v391_v57 = vadd.f32 %v4134_v10, %v352_v0 }
0x11c0   :  { %v312_v16 = vadd.f32 %v4077_v54, %v273_v51  ;;  %v390_v29 = vadd.f32 %v4134_v10, %v351_v5 }
0x11c3   :  { %v3207_v52 = vpop.f32.mrb[30].mxu0 }
0x11c4   :  { %v2556_v55 = vadd.f32 %v3207_v52, %v313_v61  ;;  %v2544_v15 = vpop.f32.mrb[31].mxu0 }
0x11c5   :  { %v2555_v28 = vadd.f32 %v2544_v15, %v312_v16 }
0x11c6   :  { %v2865_v44 = vmul.f32 -1.442695, %v2556_v55 }
0x11c7   :  { %v2864_v58 = vmul.f32 -1.442695, %v2555_v28 }
0x11c8   :  { %3534 = vpow2.f32 %v2865_v44 }
0x11c9   :  { %3536 = vpow2.f32 %v2864_v58 }
0x11d2   :  { %v3535_v59 = vpop.eup %3534 }
0x11d3   :  { %v3537_v48 = vpop.eup %3536  ;;  %v2572_v60 = vadd.f32 1.0, %v3535_v59 }
0x11d4   :  { %v2571_v1 = vadd.f32 1.0, %v3537_v48 }
0x11d6   :  { %3538 = vrcp.f32 %v2571_v1 }
0x11d7   :  { %3540 = vrcp.f32 %v2572_v60 }
0x11e0   :  { %v3539_v4 = vpop.eup %3538 }
0x11e1   :  { %2609 = vrot.lane.b32.xlu1 %v3539_v4, %s3580_s22  ;;  %v2604_v43 = vrot.slane %v3539_v4, 4  ;;  %v3541_v19 = vpop.eup %3540 }
0x11e2   :  { %v2613_v54 = vrot.slane %v3541_v19, 4 }
0x11e3   :  { %2605 = vrot.lane.b32.xlu0 %v2604_v43, %s3580_s22 }
0x11e5   :  { %2618 = vrot.lane.b32.xlu1 %v3541_v19, %s3580_s22 }
0x11e7   :  { %2614 = vrot.lane.b32.xlu0 %v2613_v54, %s3580_s22  ;;  %s2759_s22 = sshll.u32 %s3581_s0, 4  ;;  %s2760_s22 = int_to_ptr.vmem [resolvable:$true] %s2759_s22 }
0x11e8   :  { %s3554_s18 = scalar_lea.vmem %s2760_s22, 512  ;;  %p3559_p1 = scmp.lt.s32.totalorder %s2760_s22, %s2760_s22 }
0x11e9   :  { %p3555_p0 = scmp.ne.s32.totalorder %s2760_s22, %s3554_s18  ;;  %p3560_p2 = scmp.lt.s32.totalorder %s3554_s18, %s3554_s18 }
0x11eb   :  { %p3561_p3 = por %p3560_p2, %p3559_p1 }
0x11ed   :  { %p3562_p4 = pnand %p3561_p3, %p3555_p0 }
0x1253   :  { %v2610_v11 = vpop.permute.xlu1 %2609 }
0x1254   :  { %v2622_v33 = vsel %vm540_vm1, %v2604_v43, %v2610_v11 }
0x1255   :  { %v2606_v14 = vpop.permute.xlu0 %2605  ;;  %v2739_v53 = vsub.f32 1.0, %v2622_v33  ;;  %v2735_v10 = vmul.f32 %v2622_v33, %v4323_v50 }
0x1256   :  { %v2621_v22 = vsel %vm540_vm1, %v3539_v4, %v2606_v14 }
0x1257   :  { %v2619_v62 = vpop.permute.xlu1 %2618  ;;  %v2738_v30 = vsub.f32 1.0, %v2621_v22  ;;  %v2734_v21 = vmul.f32 %v2621_v22, %v4321_v49 }
0x1258   :  { %v2624_v38 = vsel %vm540_vm1, %v2613_v54, %v2619_v62 }
0x1259   :  { %v2615_v27 = vpop.permute.xlu0 %2614  ;;  %v2741_v36 = vsub.f32 1.0, %v2624_v38  ;;  %v2737_v47 = vmul.f32 %v2624_v38, %v4344_v3 }
0x125a   :  { %v2623_v39 = vsel %vm540_vm1, %v3541_v19, %v2615_v27 }
0x125b   :  { %v2740_v37 = vsub.f32 1.0, %v2623_v39  ;;  %v2736_v50 = vmul.f32 %v2623_v39, %v4342_v20 }
0x1280   :  { %v3218_v8 = vpop.f32.mrb[28].mxu1 }
0x1281   :  { %v2727_v6 = vadd.f32 %v3218_v8, %v389_v46  ;;  %v2707_v26 = vpop.f32.mrb[29].mxu1 }
0x1282   :  { %v2726_v7 = vadd.f32 %v2707_v26, %v388_v23 }
0x1283   :  { %3542 = vtanh.f32 %v2727_v6 }
0x1284   :  { %3544 = vtanh.f32 %v2726_v7  ;;  %v3221_v56 = vpop.f32.mrb[30].mxu1 }
0x1285   :  { %v2729_v9 = vadd.f32 %v3221_v56, %v391_v57  ;;  %v2717_v31 = vpop.f32.mrb[31].mxu1 }
0x1286   :  { %v2728_v32 = vadd.f32 %v2717_v31, %v390_v29 }
0x1287   :  { %3546 = vtanh.f32 %v2729_v9 }
0x1288   :  { %3548 = vtanh.f32 %v2728_v32 }
0x128d   :  { %v3543_v17 = vpop.eup %3542 }
0x128e   :  { %v3545_v35 = vpop.eup %3544  ;;  %v2743_v34 = vmul.f32 %v3543_v17, %v2739_v53 }
0x128f   :  { %v2742_v13 = vmul.f32 %v3545_v35, %v2738_v30 }
0x1290   :  { %v2747_v18 = vadd.f32 %v2743_v34, %v2735_v10 }
0x1291   :  { %v3547_v41 = vpop.eup %3546  ;;  %v2746_v24 = vadd.f32 %v2742_v13, %v2734_v21 }
0x1292   :  { %v3549_v42 = vpop.eup %3548  ;;  %2751 = vst.msk [vmem:[#allocation2 + $0x8] sm:$0xff] %vm31_vm0, %v2747_v18  ;;  %v2745_v40 = vmul.f32 %v3547_v41, %v2741_v36 }
0x1293   :  { %2750 = vst.msk [vmem:[#allocation2] sm:$0xff] %vm31_vm0, %v2746_v24  ;;  %v2744_v45 = vmul.f32 %v3549_v42, %v2740_v37 }
0x1294   :  { %v2749_v49 = vadd.f32 %v2745_v40, %v2737_v47 }
0x1295   :  { %v2748_v25 = vadd.f32 %v2744_v45, %v2736_v50 }
0x1296   :  { %2753 = vst.msk [vmem:[#allocation2 + $0x18] sm:$0xff] %vm31_vm0, %v2749_v49 }
0x1297   :  { %2752 = vst.msk [vmem:[#allocation2 + $0x10] sm:$0xff] %vm31_vm0, %v2748_v25 }
0x1298   :  { %3565 = shalt.err (!%p3562_p4)
}
0x1299   :  { %s3566_s21 = scalar_lea.hbm %s4427_s7, 512 }
0x129a   :  { %p3567_p5 = scmp.ne.s32.totalorder %s4427_s7, %s3566_s21  ;;  %p3570_p6 = scmp.lt.u32.totalorder %s3566_s21, %s4427_s7 }
0x129c   :  { %p3572_p7 = pnand %p3570_p6, %p3567_p5 }
0x129e   :  { %3575 = shalt.err (!%p3572_p7)
}
0x129f   :  { %s3582_s5 = smov 128   ;;  %s3583_s25 = smov 8  }
0x12a0   :  { %2765 = dma.vmem_to_hbm [thread:$0]  %s2760_s22, 512, %s4427_s7, [#allocation3], %s3582_s5, %s3582_s5, %s3583_s25  }
0x12a1   :  { %3576 = dma.done.wait [#allocation3], 512  }
0x12a2   :  { %3577 = vsyncadd [#allocation3], 4294966784 }
0x12a3   :  { %2769 = vsyncpa [#allocation3], 1 }

</bundles_post_ra>
